<compile_context>
chip_gen: v7x
topology: tpu7x:2x2x1
jax: 0.10.0
libtpu: 0.0.40
codegen_flags: <defaults>
</compile_context>

<pallas_src>
import functools

import jax
import jax.numpy as jnp
from jax.experimental import pallas as pl
from jax.experimental.pallas import tpu as pltpu


# --------------------------------------------------------------------------- #
# Chip detection (trace-time Python; best effort, safe fallbacks).
# --------------------------------------------------------------------------- #
def _tpu_kind() -> str:
    try:
        return jax.devices()[0].device_kind.lower()
    except Exception:
        return ""


def _is_v7x() -> bool:
    return "v7" in _tpu_kind()


def _has_bf16_vpu() -> bool:
    # v6e / v7x have bf16 VALUs; v5e (and older / unknown) do elementwise in f32.
    kind = _tpu_kind()
    return ("v6" in kind) or ("v7" in kind)


# --------------------------------------------------------------------------- #
# Kernel
# --------------------------------------------------------------------------- #
def _critic_kernel(x_ref, w1_ref, b1_ref, w2_ref, b2_ref, w3r_ref, b3_ref, o_ref):
    cdt = w1_ref.dtype   # MXU input dtype (bf16 fast path, or f32 exact path)
    edt = b1_ref.dtype   # elementwise epilogue dtype (bf16 on v6e/v7x, else f32)

    # Layer 1: Linear(in_dim, 512) on the MXU (f32 accumulation); bias + ReLU
    # in the epilogue dtype, then recast to the MXU dtype feeding layer 2.
    h1 = jnp.dot(x_ref[...], w1_ref[...], preferred_element_type=jnp.float32)
    h1 = jnp.maximum(h1.astype(edt) + b1_ref[...], 0).astype(cdt)

    # Layer 2: Linear(512, 512) on the MXU (f32 accumulation); bias + ReLU in
    # the epilogue dtype.
    h2 = jnp.dot(h1, w2_ref[...], preferred_element_type=jnp.float32)
    h2 = jnp.maximum(h2.astype(edt) + b2_ref[...], 0)

    # Layer 3: Linear(512, 1) as a VPU multiply against the (1, 512) weight row
    # + cross-lane (XLU) reduction with f32 accumulation.  Result is naturally
    # a lane-dense (1, tile) row.
    q = jnp.sum(h2 * w3r_ref[...], axis=-1, dtype=jnp.float32)[None, :] + b3_ref[...]
    o_ref[...] = q.astype(o_ref.dtype)


# --------------------------------------------------------------------------- #
# Parameter staging (do once at init / param-update time, NOT per forward).
# --------------------------------------------------------------------------- #
def prepare_params(params, *, compute_dtype=jnp.bfloat16):
    """Cast/stage CriticNet params for the kernel.

    params: dict with w1 (in_dim,512), b1 (1,512), w2 (512,512), b2 (1,512),
            w3 (512,1), b3 (1,1) — all float32 (PyTorch layout, already
            transposed to (in, out)).
    """
    h = params["w1"].shape[1]
    edt = (compute_dtype
           if (compute_dtype == jnp.bfloat16 and _has_bf16_vpu())
           else jnp.float32)
    return {
        "w1": params["w1"].astype(compute_dtype),
        "b1": params["b1"].reshape(1, h).astype(edt),
        "w2": params["w2"].astype(compute_dtype),
        "b2": params["b2"].reshape(1, h).astype(edt),
        "w3_row": params["w3"].reshape(1, h).astype(edt),
        "b3": params["b3"].reshape(1, 1).astype(jnp.float32),
    }


# --------------------------------------------------------------------------- #
# Forward
# --------------------------------------------------------------------------- #
@functools.partial(jax.jit, static_argnames=("block_n",))
def critic_net_forward(sa_pairs, staged, *, block_n=1024):
    """Q(s, a) for a batch of state-action pairs.

    sa_pairs: (N, in_dim) float32
    staged:   output of prepare_params()
    returns:  (N, 1) float32
    """
    n, in_dim = sa_pairs.shape
    h = staged["w1"].shape[1]
    cdt = staged["w1"].dtype

    # ---- batch-tile selection ------------------------------------------------
    # Large tiles amortize the ~0.35us per-grid-step overhead; only on v7x do
    # we cap the tile at (roughly) half the batch so the "parallel" axis keeps
    # >= 2 steps for the 2-TensorCore split.
    n128 = pl.cdiv(max(n, 1), 128) * 128
    tile = max(128, (int(block_n) // 128) * 128)
    tile = min(tile, n128)
    if _is_v7x() and n128 >= 256:
        # TODO(synk): validate on real v7x that dimension_semantics=("parallel",)
        # core-shards this grid axis; otherwise switch to pltpu.CORE_PARALLEL.
        half = max(128, pl.cdiv(n128 // 2, 128) * 128)
        tile = min(tile, half)
    n_pad = pl.cdiv(n, tile) * tile

    # Pre-cast x to the MXU dtype (halves the x HBM stream on the bf16 path and
    # removes per-step cast ops), then pad the batch to the tile multiple.
    x = sa_pairs.astype(cdt)
    if n_pad != n:
        x = jnp.pad(x, ((0, n_pad - n), (0, 0)))

    grid = (n_pad // tile,)

    out = pl.pallas_call(
        _critic_kernel,
        out_shape=jax.ShapeDtypeStruct((1, n_pad), jnp.float32),
        grid_spec=pltpu.PrefetchScalarGridSpec(
            num_scalar_prefetch=0,
            grid=grid,
            in_specs=[
                pl.BlockSpec((tile, in_dim), lambda i: (i, 0)),   # x tile (streamed)
                pl.BlockSpec((in_dim, h), lambda i: (0, 0)),      # w1 (VMEM-resident)
                pl.BlockSpec((1, h), lambda i: (0, 0)),           # b1
                pl.BlockSpec((h, h), lambda i: (0, 0)),           # w2 (VMEM-resident)
                pl.BlockSpec((1, h), lambda i: (0, 0)),           # b2
                pl.BlockSpec((1, h), lambda i: (0, 0)),           # w3 row
                pl.BlockSpec((1, 1), lambda i: (0, 0)),           # b3
            ],
            # Lane-dense output: one (1, tile) row per grid step (unmasked vst).
            out_specs=pl.BlockSpec((1, tile), lambda i: (0, i)),
        ),
        compiler_params=pltpu.CompilerParams(
            dimension_semantics=("parallel",),
        ),
    )(x, staged["w1"], staged["b1"], staged["w2"], staged["b2"],
      staged["w3_row"], staged["b3"])

    return out[0, :n].reshape(n, 1)


# --------------------------------------------------------------------------- #
# Init + pure-JAX reference
# --------------------------------------------------------------------------- #
def init_params(key, s_dim, a_dim, hidden=512):
    """PyTorch nn.Linear-style init: U[-1/sqrt(fan_in), 1/sqrt(fan_in)]."""
    in_dim = s_dim + a_dim
    keys = jax.random.split(key, 6)

    def linear(kw, kb, fan_in, fan_out):
        bound = 1.0 / jnp.sqrt(jnp.float32(fan_in))
        w = jax.random.uniform(kw, (fan_in, fan_out), jnp.float32, -bound, bound)
        b = jax.random.uniform(kb, (1, fan_out), jnp.float32, -bound, bound)
        return w, b

    w1, b1 = linear(keys[0], keys[1], in_dim, hidden)
    w2, b2 = linear(keys[2], keys[3], hidden, hidden)
    w3, b3 = linear(keys[4], keys[5], hidden, 1)
    return {"w1": w1, "b1": b1, "w2": w2, "b2": b2, "w3": w3, "b3": b3}


def critic_net_reference(sa_pairs, params):
    h1 = jnp.maximum(sa_pairs @ params["w1"] + params["b1"], 0.0)
    h2 = jnp.maximum(h1 @ params["w2"] + params["b2"], 0.0)
    return h2 @ params["w3"] + params["b3"]


if __name__ == "__main__":
    s_dim, a_dim = 24, 8          # in_dim = 32
    batch = 2

    key = jax.random.PRNGKey(0)
    k_params, k_x = jax.random.split(key)
    params = init_params(k_params, s_dim, a_dim)

    sa_pairs = jax.random.normal(k_x, (batch, s_dim + a_dim), jnp.float32)
    q_ref = critic_net_reference(sa_pairs, params)

    # Exact (f32 MXU + f32 epilogue) path.
    staged_f32 = prepare_params(params, compute_dtype=jnp.float32)
    q_f32 = jax.block_until_ready(critic_net_forward(sa_pairs, staged_f32))
    assert q_f32.shape == (batch, 1), q_f32.shape
    assert jnp.allclose(q_f32, q_ref, atol=1e-4, rtol=1e-4), (q_f32, q_ref)

    # Default fast path (bf16 MXU inputs + bf16 epilogue on v6e/v7x, f32
    # accumulation everywhere) - looser tolerance reflects the bf16 quantization.
    staged_bf16 = prepare_params(params)   # compute_dtype=bf16 by default
    q_bf16 = jax.block_until_ready(critic_net_forward(sa_pairs, staged_bf16))
    assert q_bf16.shape == (batch, 1), q_bf16.shape
    assert jnp.allclose(q_bf16, q_ref, atol=5e-2, rtol=5e-2), (q_bf16, q_ref)

    print("KERNEL_OK")
</pallas_src>

<mosaic_0001>
module attributes {stable_mosaic.version = 11 : i64} {
  func.func @_critic_kernel(%arg0: i32, %arg1: memref<128x32xf32, #tpu.memory_space<vmem>>, %arg2: memref<32x512xf32, #tpu.memory_space<vmem>>, %arg3: memref<1x512xf32, #tpu.memory_space<vmem>>, %arg4: memref<512x512xf32, #tpu.memory_space<vmem>>, %arg5: memref<1x512xf32, #tpu.memory_space<vmem>>, %arg6: memref<1x512xf32, #tpu.memory_space<vmem>>, %arg7: memref<1x1xf32, #tpu.memory_space<vmem>>, %arg8: memref<1x128xf32, #tpu.memory_space<vmem>>) attributes {dimension_semantics = [#tpu.dimension_semantics<parallel>], iteration_bounds = array<i64: 1>, scalar_prefetch = 0 : i64, scratch_operands = 0 : i64, tpu.core_type = #tpu.core_type<tc>, window_params = [{transform_indices = @transform_0, window_bounds = array<i64: 128, 32>}, {pipeline_mode = #tpu.pipeline_mode<synchronous>, transform_indices = @transform_1, window_bounds = array<i64: 32, 512>}, {pipeline_mode = #tpu.pipeline_mode<synchronous>, transform_indices = @transform_2, window_bounds = array<i64: 1, 512>}, {pipeline_mode = #tpu.pipeline_mode<synchronous>, transform_indices = @transform_3, window_bounds = array<i64: 512, 512>}, {pipeline_mode = #tpu.pipeline_mode<synchronous>, transform_indices = @transform_4, window_bounds = array<i64: 1, 512>}, {pipeline_mode = #tpu.pipeline_mode<synchronous>, transform_indices = @transform_5, window_bounds = array<i64: 1, 512>}, {pipeline_mode = #tpu.pipeline_mode<synchronous>, transform_indices = @transform_6, window_bounds = array<i64: 1, 1>}, {transform_indices = @transform_7, window_bounds = array<i64: 1, 128>}]} {
    %c0 = arith.constant 0 : index
    %c0_0 = arith.constant 0 : index
    %0 = vector.load %arg1[%c0, %c0_0] : memref<128x32xf32, #tpu.memory_space<vmem>>, vector<128x32xf32>
    %c0_1 = arith.constant 0 : index
    %c0_2 = arith.constant 0 : index
    %1 = vector.load %arg2[%c0_1, %c0_2] : memref<32x512xf32, #tpu.memory_space<vmem>>, vector<32x512xf32>
    %cst = arith.constant dense<0.000000e+00> : vector<128x512xf32>
    %2 = tpu.matmul %0, %1, %cst {dimension_numbers = #tpu.dot_dimension_numbers<[1], [0], [0], [1], [0, 0, 1, 1], [], []>} : vector<128x32xf32>, vector<32x512xf32>, vector<128x512xf32> -> vector<128x512xf32>
    %c0_3 = arith.constant 0 : index
    %c0_4 = arith.constant 0 : index
    %3 = vector.load %arg3[%c0_3, %c0_4] : memref<1x512xf32, #tpu.memory_space<vmem>>, vector<1x512xf32>
    %4 = vector.broadcast %3 : vector<1x512xf32> to vector<128x512xf32>
    %5 = arith.addf %2, %4 : vector<128x512xf32>
    %cst_5 = arith.constant 0.000000e+00 : f32
    %6 = vector.broadcast %cst_5 : f32 to vector<128x512xf32>
    %7 = arith.maximumf %5, %6 : vector<128x512xf32>
    %c0_6 = arith.constant 0 : index
    %c0_7 = arith.constant 0 : index
    %8 = vector.load %arg4[%c0_6, %c0_7] : memref<512x512xf32, #tpu.memory_space<vmem>>, vector<512x512xf32>
    %cst_8 = arith.constant dense<0.000000e+00> : vector<128x512xf32>
    %9 = tpu.matmul %7, %8, %cst_8 {dimension_numbers = #tpu.dot_dimension_numbers<[1], [0], [0], [1], [0, 0, 1, 1], [], []>} : vector<128x512xf32>, vector<512x512xf32>, vector<128x512xf32> -> vector<128x512xf32>
    %c0_9 = arith.constant 0 : index
    %c0_10 = arith.constant 0 : index
    %10 = vector.load %arg5[%c0_9, %c0_10] : memref<1x512xf32, #tpu.memory_space<vmem>>, vector<1x512xf32>
    %11 = vector.broadcast %10 : vector<1x512xf32> to vector<128x512xf32>
    %12 = arith.addf %9, %11 : vector<128x512xf32>
    %cst_11 = arith.constant 0.000000e+00 : f32
    %13 = vector.broadcast %cst_11 : f32 to vector<128x512xf32>
    %14 = arith.maximumf %12, %13 : vector<128x512xf32>
    %c0_12 = arith.constant 0 : index
    %c0_13 = arith.constant 0 : index
    %15 = vector.load %arg6[%c0_12, %c0_13] : memref<1x512xf32, #tpu.memory_space<vmem>>, vector<1x512xf32>
    %16 = vector.broadcast %15 : vector<1x512xf32> to vector<128x512xf32>
    %17 = arith.mulf %14, %16 : vector<128x512xf32>
    %cst_14 = arith.constant dense<0.000000e+00> : vector<128xf32>
    %18 = vector.multi_reduction <add>, %17, %cst_14 [1] : vector<128x512xf32> to vector<128xf32>
    %19 = vector.shape_cast %18 : vector<128xf32> to vector<1x128xf32>
    %c0_15 = arith.constant 0 : index
    %c0_16 = arith.constant 0 : index
    %20 = vector.load %arg7[%c0_15, %c0_16] : memref<1x1xf32, #tpu.memory_space<vmem>>, vector<1x1xf32>
    %21 = vector.broadcast %20 : vector<1x1xf32> to vector<1x128xf32>
    %22 = arith.addf %19, %21 : vector<1x128xf32>
    %c0_17 = arith.constant 0 : index
    %c0_18 = arith.constant 0 : index
    %23 = vector.load %arg8[%c0_17, %c0_18] : memref<1x128xf32, #tpu.memory_space<vmem>>, vector<1x128xf32>
    tpu.vector_store %arg8[%c0_17, %c0_18], %22 {strides = array<i32>} : memref<1x128xf32, #tpu.memory_space<vmem>>, vector<1x128xf32>,
    return
  }
  func.func @transform_0(%arg0: i32) -> (i32, i32) {
    %c0_i32 = arith.constant 0 : i32
    %c0_i32_0 = arith.constant 0 : i32
    return %arg0, %c0_i32 : i32, i32
  }
  func.func @transform_1(%arg0: i32) -> (i32, i32) {
    %c0_i32 = arith.constant 0 : i32
    %c0_i32_0 = arith.constant 0 : i32
    %c0_i32_1 = arith.constant 0 : i32
    return %c0_i32, %c0_i32_0 : i32, i32
  }
  func.func @transform_2(%arg0: i32) -> (i32, i32) {
    %c0_i32 = arith.constant 0 : i32
    %c0_i32_0 = arith.constant 0 : i32
    %c0_i32_1 = arith.constant 0 : i32
    return %c0_i32, %c0_i32_0 : i32, i32
  }
  func.func @transform_3(%arg0: i32) -> (i32, i32) {
    %c0_i32 = arith.constant 0 : i32
    %c0_i32_0 = arith.constant 0 : i32
    %c0_i32_1 = arith.constant 0 : i32
    return %c0_i32, %c0_i32_0 : i32, i32
  }
  func.func @transform_4(%arg0: i32) -> (i32, i32) {
    %c0_i32 = arith.constant 0 : i32
    %c0_i32_0 = arith.constant 0 : i32
    %c0_i32_1 = arith.constant 0 : i32
    return %c0_i32, %c0_i32_0 : i32, i32
  }
  func.func @transform_5(%arg0: i32) -> (i32, i32) {
    %c0_i32 = arith.constant 0 : i32
    %c0_i32_0 = arith.constant 0 : i32
    %c0_i32_1 = arith.constant 0 : i32
    return %c0_i32, %c0_i32_0 : i32, i32
  }
  func.func @transform_6(%arg0: i32) -> (i32, i32) {
    %c0_i32 = arith.constant 0 : i32
    %c0_i32_0 = arith.constant 0 : i32
    %c0_i32_1 = arith.constant 0 : i32
    return %c0_i32, %c0_i32_0 : i32, i32
  }
  func.func @transform_7(%arg0: i32) -> (i32, i32) {
    %c0_i32 = arith.constant 0 : i32
    %c0_i32_0 = arith.constant 0 : i32
    return %c0_i32, %arg0 : i32, i32
  }
}

</mosaic_0001>

<bundles_post_ra>
// kernel: critic_net_forward.1
= control target key start
LH: loop header
LB: loop body
LE: loop exit
PB: predicated region body
PF: predicated region fallthrough
CT: control target
= control target key end

     0   :  { %s2944_s0 = inlined_call_operand.vmem [shape: f32[128,32], index: 0, kind: input, shape index: {}]   ;;  %s2945_s1 = inlined_call_operand.vmem [shape: f32[32,512], index: 1, kind: input, shape index: {}]   ;;  %s2946_s2 = inlined_call_operand.vmem [shape: f32[1,512], index: 2, kind: input, shape index: {}]   ;;  %s2947_s3 = inlined_call_operand.hbm [shape: f32[512,512], index: 3, kind: input, shape index: {}]   ;;  %s2948_s4 = inlined_call_operand.vmem [shape: f32[1,512], index: 4, kind: input, shape index: {}]   ;;  %s2949_s5 = inlined_call_operand.vmem [shape: f32[1,512], index: 5, kind: input, shape index: {}]   ;;  %s2950_s6 = inlined_call_operand.<no memory space> [shape: f32[1,1], index: 6, kind: input, shape index: {}]   ;;  %s2951_s7 = inlined_call_operand.vmem [shape: f32[1,128], index: 7, kind: output, shape index: {}]  }
   0x1   :  { %v12_v0 = vstv %s2950_s6 }
   0x2   :  { %13 = vst [vmem:[#allocation2] sm:$0x1] %v12_v0 }
   0x3   :  { %14 = vsyncpa [#allocation4], 0  ;;  %s2306_s26 = smov [#allocation3]   ;;  %s2282_s30 = scalar_lea.hbm %s2947_s3, 32768 }
   0x4   :  { %s26_s27 = sshll.u32 %s2306_s26, 4  ;;  %p2283_p0 = scmp.ne.s32.totalorder %s2947_s3, %s2282_s30  ;;  %s27_s27 = int_to_ptr.vmem [resolvable:$true] %s26_s27 }
   0x5   :  { %p2286_p1 = scmp.lt.u32.totalorder %s2282_s30, %s2947_s3 }
   0x7   :  { %p2288_p2 = pnand %p2286_p1, %p2283_p0 }
   0x9   :  { %2291 = shalt.err (!%p2288_p2)
}
   0xa   :  { %s2292_s6 = scalar_lea.vmem %s27_s27, 32768  ;;  %p2297_p4 = scmp.lt.s32.totalorder %s27_s27, %s27_s27 }
   0xb   :  { %p2293_p3 = scmp.ne.s32.totalorder %s27_s27, %s2292_s6  ;;  %p2298_p5 = scmp.lt.s32.totalorder %s2292_s6, %s2292_s6 }
   0xd   :  { %p2299_p6 = por %p2298_p5, %p2297_p4 }
   0xf   :  { %p2300_p7 = pnand %p2299_p6, %p2293_p3 }
  0x11   :  { %2303 = shalt.err (!%p2300_p7)
}
  0x12   :  { %s2307_s12 = smov 512   ;;  %s2308_s13 = smov 32  }
  0x13   :  { %32 = dma.hbm_to_vmem [thread:$0]  %s2947_s3, 32768, %s27_s27, [#allocation4], %s2307_s12, %s2307_s12, %s2308_s13  }
  0x14   :  { %2304 = dma.done.wait [#allocation4], 32768  }
  0x15   :  { %2305 = vsyncadd [#allocation4], 4294934528  ;;  %v2309_v1 = vmov 0.0   ;;  %v59_v2 = vld [vmem:[%s2945_s1 + $0x8] sm:$0xff]  ;;  %v58_v4 = vld [vmem:[%s2945_s1] sm:$0xff]  ;;  %vm96_vm0 = vcmask 261120  }
  0x16   :  { %209 = vmatprep.mubr.f32.mxu0 %v2309_v1  ;;  %370 = vmatprep.mubr.f32.mxu1 %v2309_v1  ;;  %v63_v3 = vld [vmem:[%s2945_s1 + $0x28] sm:$0xff]  ;;  %v62_v6 = vld [vmem:[%s2945_s1 + $0x20] sm:$0xff]  ;;  %v61_v14 = vld [vmem:[%s2945_s1 + $0x18] sm:$0xff]  ;;  %vm1736_vm1 = vcmask 130112   ;;  %vm1743_vm2 = vcmask 195712   ;;  %vm1750_vm3 = vcmask 261312  }
  0x17   :  { %v1875_v5 = vpack.c.bf16 %v63_v3, %v59_v2  ;;  %v67_v7 = vld [vmem:[%s2945_s1 + $0x48] sm:$0xff]  ;;  %v1877_v9 = vpack.c.bf16 %v62_v6, %v58_v4  ;;  %v66_v11 = vld [vmem:[%s2945_s1 + $0x40] sm:$0xff]  ;;  %v65_v15 = vld [vmem:[%s2945_s1 + $0x38] sm:$0xff]  ;;  %vm1757_vm4 = vcmask 326912   ;;  %vm1764_vm5 = vcmask 392512  }
  0x18   :  { %v71_v8 = vld [vmem:[%s2945_s1 + $0x68] sm:$0xff]  ;;  %v70_v12 = vld [vmem:[%s2945_s1 + $0x60] sm:$0xff]  ;;  %v1883_v17 = vpack.c.bf16 %v65_v15, %v61_v14  ;;  %v60_v18 = vld [vmem:[%s2945_s1 + $0x10] sm:$0xff]  ;;  %vm1771_vm6 = vcmask 458112   ;;  %vm1778_vm7 = vcmask 523712   ;;  %vm1785_vm8 = vcmask 589312  }
  0x19   :  { %v1879_v10 = vpack.c.bf16 %v71_v8, %v67_v7  ;;  %1876 = vmatprep.subr.bf16.mxu0 %v1875_v5  ;;  %v1881_v13 = vpack.c.bf16 %v70_v12, %v66_v11  ;;  %v42_v16 = vld [vmem:[%s2944_s0] sm:$0xff]  ;;  %v64_v19 = vld [vmem:[%s2945_s1 + $0x30] sm:$0xff]  ;;  %v69_v21 = vld [vmem:[%s2945_s1 + $0x58] sm:$0xff]  ;;  %vm1792_vm9 = vcmask 654912   ;;  %vm1799_vm10 = vcmask 720512  }
  0x1a   :  { %1878 = vmatpush1.bf16.msra.mxu0 %v1877_v9  ;;  %v1885_v20 = vpack.c.bf16 %v64_v19, %v60_v18  ;;  %v73_v22 = vld [vmem:[%s2945_s1 + $0x78] sm:$0xff]  ;;  %v2416_v23 = vld [vmem:[%s2944_s0 + $0x8] sm:$0xff]  ;;  %1884 = vmatprep.subr.bf16.mxu1 %v1883_v17  ;;  %v68_v25 = vld [vmem:[%s2945_s1 + $0x50] sm:$0xff]  ;;  %vm1806_vm11 = vcmask 786112   ;;  %vm1813_vm12 = vcmask 851712   ;;  %vm1820_vm13 = vcmask 917312  }
  0x1b   :  { %1880 = vmatprep.subr.bf16.mxu0 %v1879_v10  ;;  %v1887_v24 = vpack.c.bf16 %v73_v22, %v69_v21  ;;  %v72_v26 = vld [vmem:[%s2945_s1 + $0x70] sm:$0xff]  ;;  %v531_v30 = vld [vmem:[#allocation3] sm:$0xff]  ;;  %v534_v34 = vld [vmem:[#allocation3 + $0x18] sm:$0xff]  ;;  %vm1827_vm14 = vcmask 982912   ;;  %vm1834_vm15 = vcmask 1048512  }
  0x1c   :  { %v532_v27 = vld [vmem:[#allocation3 + $0x8] sm:$0xff]  ;;  %1886 = vmatpush1.bf16.msra.mxu1 %v1885_v20  ;;  %v1889_v28 = vpack.c.bf16 %v72_v26, %v68_v25  ;;  %v535_v31 = vld [vmem:[#allocation3 + $0x20] sm:$0xff]  ;;  %v538_v35 = vld [vmem:[#allocation3 + $0x38] sm:$0xff] }
  0x1d   :  { %v536_v29 = vld [vmem:[#allocation3 + $0x28] sm:$0xff]  ;;  %1888 = vmatprep.subr.bf16.mxu1 %v1887_v24  ;;  %v1893_v33 = vpack.c.bf16 %v535_v31, %v531_v30  ;;  %v533_v36 = vld [vmem:[#allocation3 + $0x10] sm:$0xff]  ;;  %v2019_v37 = vpack.c.bf16 %v538_v35, %v534_v34  ;;  %v539_v42 = vld [vmem:[#allocation3 + $0x40] sm:$0xff] }
  0x1e   :  { %1882 = vmatpush1.bf16.msra.mxu0 %v1881_v13  ;;  %v1891_v32 = vpack.c.bf16 %v536_v29, %v532_v27  ;;  %v537_v38 = vld [vmem:[#allocation3 + $0x30] sm:$0xff]  ;;  %v540_v39 = vld [vmem:[#allocation3 + $0x48] sm:$0xff]  ;;  %v543_v43 = vld [vmem:[#allocation3 + $0x60] sm:$0xff] }
  0x1f   :  { %v544_v40 = vld [vmem:[#allocation3 + $0x68] sm:$0xff]  ;;  %v542_v44 = vld [vmem:[#allocation3 + $0x58] sm:$0xff]  ;;  %v2021_v47 = vpack.c.bf16 %v537_v38, %v533_v36  ;;  %v1897_v50 = vpack.c.bf16 %v543_v43, %v539_v42  ;;  %v541_v52 = vld [vmem:[#allocation3 + $0x50] sm:$0xff] }
  0x20   :  { %1892 = vmatprep.subr.bf16.mxu0 %v1891_v32  ;;  %v1895_v41 = vpack.c.bf16 %v544_v40, %v540_v39  ;;  %1890 = vmatpush1.bf16.msra.mxu1 %v1889_v28  ;;  %v546_v45 = vld [vmem:[#allocation3 + $0x78] sm:$0xff]  ;;  %v44_v46 = vld [vmem:[%s2944_s0 + $0x10] sm:$0xff]  ;;  %v547_v54 = vld [vmem:[#allocation3 + $0x80] sm:$0xff] }
  0x21   :  { %1843 = vmatmul.mubr.msk.f32.vlgmr.msra.gmra.mrb[0].mxu0 %vm96_vm0, %v42_v16  ;;  %v548_v48 = vld [vmem:[#allocation3 + $0x88] sm:$0xff]  ;;  %2020 = vmatprep.subr.bf16.mxu1 %v2019_v37  ;;  %v2023_v51 = vpack.c.bf16 %v546_v45, %v542_v44  ;;  %v545_v53 = vld [vmem:[#allocation3 + $0x70] sm:$0xff]  ;;  %v551_v56 = vld [vmem:[#allocation3 + $0xa0] sm:$0xff] }
  0x22   :  { %215 = vmatprep.mubr.f32.mxu0 %v2309_v1  ;;  %1894 = vmatpush1.bf16.msra.mxu0 %v1893_v33  ;;  %v552_v49 = vld [vmem:[#allocation3 + $0xa8] sm:$0xff]  ;;  %v550_v57 = vld [vmem:[#allocation3 + $0x98] sm:$0xff]  ;;  %v2025_v62 = vpack.c.bf16 %v545_v53, %v541_v52  ;;  %v1901_v63 = vpack.c.bf16 %v551_v56, %v547_v54  ;;  %v549_v2 = vld [vmem:[#allocation3 + $0x90] sm:$0xff] }
  0x23   :  { %1896 = vmatprep.subr.bf16.mxu0 %v1895_v41  ;;  %1859 = vmatmul.mubr.msk.f32.vlgmr.msra.gmra.mrb[0].mxu1 %vm96_vm0, %v42_v16  ;;  %v1899_v55 = vpack.c.bf16 %v552_v49, %v548_v48  ;;  %v554_v58 = vld [vmem:[#allocation3 + $0xb8] sm:$0xff]  ;;  %v556_v59 = vld [vmem:[#allocation3 + $0xc8] sm:$0xff]  ;;  %v553_v3 = vld [vmem:[#allocation3 + $0xb0] sm:$0xff] }
  0x24   :  { %376 = vmatprep.mubr.f32.mxu1 %v2309_v1  ;;  %v560_v60 = vld [vmem:[#allocation3 + $0xe8] sm:$0xff]  ;;  %v45_v61 = vld [vmem:[%s2944_s0 + $0x18] sm:$0xff]  ;;  %2022 = vmatpush1.bf16.msra.mxu1 %v2021_v47  ;;  %v2027_v0 = vpack.c.bf16 %v554_v58, %v550_v57  ;;  %v555_v4 = vld [vmem:[#allocation3 + $0xc0] sm:$0xff]  ;;  %v2029_v12 = vpack.c.bf16 %v553_v3, %v549_v2 }
  0x25   :  { %1844 = vmatmul.mubr.msk.f32.gmra.mrb[2].mxu0 %vm96_vm0, %v2416_v23  ;;  %2024 = vmatprep.subr.bf16.mxu1 %v2023_v51  ;;  %v1903_v5 = vpack.c.bf16 %v560_v60, %v556_v59  ;;  %v559_v6 = vld [vmem:[#allocation3 + $0xe0] sm:$0xff]  ;;  %v558_v7 = vld [vmem:[#allocation3 + $0xd8] sm:$0xff]  ;;  %v564_v9 = vld [vmem:[#allocation3 + $0x108] sm:$0xff] }
  0x26   :  { %221 = vmatprep.mubr.f32.mxu0 %v2309_v1  ;;  %1898 = vmatpush1.bf16.msra.mxu0 %v1897_v50  ;;  %v562_v8 = vld [vmem:[#allocation3 + $0xf8] sm:$0xff]  ;;  %v568_v10 = vld [vmem:[#allocation3 + $0x128] sm:$0xff]  ;;  %v1905_v13 = vpack.c.bf16 %v559_v6, %v555_v4  ;;  %v557_v15 = vld [vmem:[#allocation3 + $0xd0] sm:$0xff] }
  0x27   :  { %1860 = vmatmul.mubr.msk.f32.gmra.mrb[2].mxu1 %vm96_vm0, %v2416_v23  ;;  %1900 = vmatprep.subr.bf16.mxu0 %v1899_v55  ;;  %v46_v11 = vld [vmem:[%s2944_s0 + $0x20] sm:$0xff]  ;;  %v2031_v14 = vpack.c.bf16 %v562_v8, %v558_v7  ;;  %v561_v16 = vld [vmem:[#allocation3 + $0xf0] sm:$0xff]  ;;  %v1907_v18 = vpack.c.bf16 %v568_v10, %v564_v9  ;;  %v572_v22 = vld [vmem:[#allocation3 + $0x148] sm:$0xff] }
  0x28   :  { %382 = vmatprep.mubr.f32.mxu1 %v2309_v1  ;;  %2026 = vmatpush1.bf16.msra.mxu1 %v2025_v62  ;;  %v563_v17 = vld [vmem:[#allocation3 + $0x100] sm:$0xff]  ;;  %v566_v20 = vld [vmem:[#allocation3 + $0x118] sm:$0xff]  ;;  %v576_v23 = vld [vmem:[#allocation3 + $0x168] sm:$0xff]  ;;  %v2033_v25 = vpack.c.bf16 %v561_v16, %v557_v15 }
  0x29   :  { %1845 = vmatmul.mubr.msk.f32.gmra.mrb[4].mxu0 %vm96_vm0, %v44_v46  ;;  %2028 = vmatprep.subr.bf16.mxu1 %v2027_v0  ;;  %v567_v19 = vld [vmem:[#allocation3 + $0x120] sm:$0xff]  ;;  %v570_v21 = vld [vmem:[#allocation3 + $0x138] sm:$0xff]  ;;  %v565_v28 = vld [vmem:[#allocation3 + $0x110] sm:$0xff]  ;;  %v1911_v31 = vpack.c.bf16 %v576_v23, %v572_v22 }
  0x2a   :  { %227 = vmatprep.mubr.f32.mxu0 %v2309_v1  ;;  %1902 = vmatpush1.bf16.msra.mxu0 %v1901_v63  ;;  %v47_v24 = vld [vmem:[%s2944_s0 + $0x28] sm:$0xff]  ;;  %v1909_v26 = vpack.c.bf16 %v567_v19, %v563_v17  ;;  %v2035_v27 = vpack.c.bf16 %v570_v21, %v566_v20  ;;  %v569_v29 = vld [vmem:[#allocation3 + $0x130] sm:$0xff]  ;;  %v574_v33 = vld [vmem:[#allocation3 + $0x158] sm:$0xff] }
  0x2b   :  { %1861 = vmatmul.mubr.msk.f32.gmra.mrb[4].mxu1 %vm96_vm0, %v44_v46  ;;  %1904 = vmatprep.subr.bf16.mxu0 %v1903_v5  ;;  %v571_v30 = vld [vmem:[#allocation3 + $0x140] sm:$0xff]  ;;  %v578_v34 = vld [vmem:[#allocation3 + $0x178] sm:$0xff]  ;;  %v580_v35 = vld [vmem:[#allocation3 + $0x188] sm:$0xff]  ;;  %v2037_v38 = vpack.c.bf16 %v569_v29, %v565_v28 }
  0x2c   :  { %388 = vmatprep.mubr.f32.mxu1 %v2309_v1  ;;  %2030 = vmatpush1.bf16.msra.mxu1 %v2029_v12  ;;  %v575_v32 = vld [vmem:[#allocation3 + $0x160] sm:$0xff]  ;;  %v584_v36 = vld [vmem:[#allocation3 + $0x1a8] sm:$0xff]  ;;  %v2039_v40 = vpack.c.bf16 %v578_v34, %v574_v33  ;;  %v573_v41 = vld [vmem:[#allocation3 + $0x150] sm:$0xff] }
  0x2d   :  { %1846 = vmatmul.mubr.msk.f32.gmra.mrb[6].mxu0 %vm96_vm0, %v45_v61  ;;  %2032 = vmatprep.subr.bf16.mxu1 %v2031_v14  ;;  %v48_v37 = vld [vmem:[%s2944_s0 + $0x30] sm:$0xff]  ;;  %v1913_v39 = vpack.c.bf16 %v575_v32, %v571_v30  ;;  %v579_v43 = vld [vmem:[#allocation3 + $0x180] sm:$0xff]  ;;  %v1915_v44 = vpack.c.bf16 %v584_v36, %v580_v35  ;;  %v582_v46 = vld [vmem:[#allocation3 + $0x198] sm:$0xff] }
  0x2e   :  { %233 = vmatprep.mubr.f32.mxu0 %v2309_v1  ;;  %1906 = vmatpush1.bf16.msra.mxu0 %v1905_v13  ;;  %v577_v42 = vld [vmem:[#allocation3 + $0x170] sm:$0xff]  ;;  %v583_v45 = vld [vmem:[#allocation3 + $0x1a0] sm:$0xff]  ;;  %v586_v47 = vld [vmem:[#allocation3 + $0x1b8] sm:$0xff] }
  0x2f   :  { %1862 = vmatmul.mubr.msk.f32.gmra.mrb[6].mxu1 %vm96_vm0, %v45_v61  ;;  %1908 = vmatprep.subr.bf16.mxu0 %v1907_v18  ;;  %v588_v48 = vld [vmem:[#allocation3 + $0x1c8] sm:$0xff]  ;;  %v49_v50 = vld [vmem:[%s2944_s0 + $0x38] sm:$0xff]  ;;  %v2041_v51 = vpack.c.bf16 %v577_v42, %v573_v41  ;;  %v1917_v52 = vpack.c.bf16 %v583_v45, %v579_v43  ;;  %v2043_v53 = vpack.c.bf16 %v586_v47, %v582_v46  ;;  %v587_v56 = vld [vmem:[#allocation3 + $0x1c0] sm:$0xff] }
  0x30   :  { %394 = vmatprep.mubr.f32.mxu1 %v2309_v1  ;;  %2034 = vmatpush1.bf16.msra.mxu1 %v2033_v25  ;;  %v592_v49 = vld [vmem:[#allocation3 + $0x1e8] sm:$0xff]  ;;  %v581_v54 = vld [vmem:[#allocation3 + $0x190] sm:$0xff]  ;;  %v591_v58 = vld [vmem:[#allocation3 + $0x1e0] sm:$0xff] }
  0x31   :  { %1847 = vmatmul.mubr.msk.f32.gmra.mrb[8].mxu0 %vm96_vm0, %v46_v11  ;;  %2036 = vmatprep.subr.bf16.mxu1 %v2035_v27  ;;  %v585_v55 = vld [vmem:[#allocation3 + $0x1b0] sm:$0xff]  ;;  %v1919_v57 = vpack.c.bf16 %v592_v49, %v588_v48  ;;  %v590_v59 = vld [vmem:[#allocation3 + $0x1d8] sm:$0xff]  ;;  %v596_v61 = vld [vmem:[#allocation3 + $0x208] sm:$0xff]  ;;  %v1921_v2 = vpack.c.bf16 %v591_v58, %v587_v56 }
  0x32   :  { %239 = vmatprep.mubr.f32.mxu0 %v2309_v1  ;;  %1910 = vmatpush1.bf16.msra.mxu0 %v1909_v26  ;;  %v594_v60 = vld [vmem:[#allocation3 + $0x1f8] sm:$0xff]  ;;  %v600_v62 = vld [vmem:[#allocation3 + $0x228] sm:$0xff]  ;;  %v2045_v0 = vpack.c.bf16 %v585_v55, %v581_v54  ;;  %v589_v4 = vld [vmem:[#allocation3 + $0x1d0] sm:$0xff] }
  0x33   :  { %1863 = vmatmul.mubr.msk.f32.gmra.mrb[8].mxu1 %vm96_vm0, %v46_v11  ;;  %1912 = vmatprep.subr.bf16.mxu0 %v1911_v31  ;;  %v50_v63 = vld [vmem:[%s2944_s0 + $0x40] sm:$0xff]  ;;  %v2047_v3 = vpack.c.bf16 %v594_v60, %v590_v59  ;;  %v593_v5 = vld [vmem:[#allocation3 + $0x1f0] sm:$0xff]  ;;  %v1923_v7 = vpack.c.bf16 %v600_v62, %v596_v61  ;;  %v604_v11 = vld [vmem:[#allocation3 + $0x248] sm:$0xff] }
  0x34   :  { %400 = vmatprep.mubr.f32.mxu1 %v2309_v1  ;;  %2038 = vmatpush1.bf16.msra.mxu1 %v2037_v38  ;;  %v595_v6 = vld [vmem:[#allocation3 + $0x200] sm:$0xff]  ;;  %v598_v9 = vld [vmem:[#allocation3 + $0x218] sm:$0xff]  ;;  %v608_v12 = vld [vmem:[#allocation3 + $0x268] sm:$0xff]  ;;  %v2049_v14 = vpack.c.bf16 %v593_v5, %v589_v4 }
  0x35   :  { %1848 = vmatmul.mubr.msk.f32.gmra.mrb[10].mxu0 %vm96_vm0, %v47_v24  ;;  %2040 = vmatprep.subr.bf16.mxu1 %v2039_v40  ;;  %v599_v8 = vld [vmem:[#allocation3 + $0x220] sm:$0xff]  ;;  %v602_v10 = vld [vmem:[#allocation3 + $0x238] sm:$0xff]  ;;  %v597_v17 = vld [vmem:[#allocation3 + $0x210] sm:$0xff]  ;;  %v1927_v20 = vpack.c.bf16 %v608_v12, %v604_v11 }
  0x36   :  { %245 = vmatprep.mubr.f32.mxu0 %v2309_v1  ;;  %1914 = vmatpush1.bf16.msra.mxu0 %v1913_v39  ;;  %v51_v13 = vld [vmem:[%s2944_s0 + $0x48] sm:$0xff]  ;;  %v1925_v15 = vpack.c.bf16 %v599_v8, %v595_v6  ;;  %v2051_v16 = vpack.c.bf16 %v602_v10, %v598_v9  ;;  %v601_v18 = vld [vmem:[#allocation3 + $0x230] sm:$0xff]  ;;  %v606_v22 = vld [vmem:[#allocation3 + $0x258] sm:$0xff] }
  0x37   :  { %1864 = vmatmul.mubr.msk.f32.gmra.mrb[10].mxu1 %vm96_vm0, %v47_v24  ;;  %1916 = vmatprep.subr.bf16.mxu0 %v1915_v44  ;;  %v603_v19 = vld [vmem:[#allocation3 + $0x240] sm:$0xff]  ;;  %v610_v23 = vld [vmem:[#allocation3 + $0x278] sm:$0xff]  ;;  %v612_v24 = vld [vmem:[#allocation3 + $0x288] sm:$0xff]  ;;  %v2053_v27 = vpack.c.bf16 %v601_v18, %v597_v17 }
  0x38   :  { %406 = vmatprep.mubr.f32.mxu1 %v2309_v1  ;;  %2042 = vmatpush1.bf16.msra.mxu1 %v2041_v51  ;;  %v607_v21 = vld [vmem:[#allocation3 + $0x260] sm:$0xff]  ;;  %v616_v25 = vld [vmem:[#allocation3 + $0x2a8] sm:$0xff]  ;;  %v2055_v29 = vpack.c.bf16 %v610_v23, %v606_v22  ;;  %v605_v30 = vld [vmem:[#allocation3 + $0x250] sm:$0xff] }
  0x39   :  { %1849 = vmatmul.mubr.msk.f32.gmra.mrb[12].mxu0 %vm96_vm0, %v48_v37  ;;  %2044 = vmatprep.subr.bf16.mxu1 %v2043_v53  ;;  %v52_v26 = vld [vmem:[%s2944_s0 + $0x50] sm:$0xff]  ;;  %v1929_v28 = vpack.c.bf16 %v607_v21, %v603_v19  ;;  %v611_v32 = vld [vmem:[#allocation3 + $0x280] sm:$0xff]  ;;  %v1931_v33 = vpack.c.bf16 %v616_v25, %v612_v24  ;;  %v614_v35 = vld [vmem:[#allocation3 + $0x298] sm:$0xff] }
  0x3a   :  { %251 = vmatprep.mubr.f32.mxu0 %v2309_v1  ;;  %1918 = vmatpush1.bf16.msra.mxu0 %v1917_v52  ;;  %v609_v31 = vld [vmem:[#allocation3 + $0x270] sm:$0xff]  ;;  %v615_v34 = vld [vmem:[#allocation3 + $0x2a0] sm:$0xff]  ;;  %v618_v36 = vld [vmem:[#allocation3 + $0x2b8] sm:$0xff] }
  0x3b   :  { %1865 = vmatmul.mubr.msk.f32.gmra.mrb[12].mxu1 %vm96_vm0, %v48_v37  ;;  %1920 = vmatprep.subr.bf16.mxu0 %v1919_v57  ;;  %v620_v37 = vld [vmem:[#allocation3 + $0x2c8] sm:$0xff]  ;;  %v53_v39 = vld [vmem:[%s2944_s0 + $0x58] sm:$0xff]  ;;  %v2057_v40 = vpack.c.bf16 %v609_v31, %v605_v30  ;;  %v1933_v41 = vpack.c.bf16 %v615_v34, %v611_v32  ;;  %v2059_v42 = vpack.c.bf16 %v618_v36, %v614_v35  ;;  %v619_v45 = vld [vmem:[#allocation3 + $0x2c0] sm:$0xff] }
  0x3c   :  { %412 = vmatprep.mubr.f32.mxu1 %v2309_v1  ;;  %2046 = vmatpush1.bf16.msra.mxu1 %v2045_v0  ;;  %v624_v38 = vld [vmem:[#allocation3 + $0x2e8] sm:$0xff]  ;;  %v613_v43 = vld [vmem:[#allocation3 + $0x290] sm:$0xff]  ;;  %v623_v47 = vld [vmem:[#allocation3 + $0x2e0] sm:$0xff] }
  0x3d   :  { %1850 = vmatmul.mubr.msk.f32.gmra.mrb[14].mxu0 %vm96_vm0, %v49_v50  ;;  %2048 = vmatprep.subr.bf16.mxu1 %v2047_v3  ;;  %v617_v44 = vld [vmem:[#allocation3 + $0x2b0] sm:$0xff]  ;;  %v1935_v46 = vpack.c.bf16 %v624_v38, %v620_v37  ;;  %v622_v48 = vld [vmem:[#allocation3 + $0x2d8] sm:$0xff]  ;;  %v632_v51 = vld [vmem:[#allocation3 + $0x328] sm:$0xff]  ;;  %v1937_v54 = vpack.c.bf16 %v623_v47, %v619_v45 }
  0x3e   :  { %257 = vmatprep.mubr.f32.mxu0 %v2309_v1  ;;  %1922 = vmatpush1.bf16.msra.mxu0 %v1921_v2  ;;  %v626_v49 = vld [vmem:[#allocation3 + $0x2f8] sm:$0xff]  ;;  %v2061_v53 = vpack.c.bf16 %v617_v44, %v613_v43  ;;  %v621_v56 = vld [vmem:[#allocation3 + $0x2d0] sm:$0xff]  ;;  %v627_v58 = vld [vmem:[#allocation3 + $0x300] sm:$0xff] }
  0x3f   :  { %1866 = vmatmul.mubr.msk.f32.gmra.mrb[14].mxu1 %vm96_vm0, %v49_v50  ;;  %1924 = vmatprep.subr.bf16.mxu0 %v1923_v7  ;;  %v628_v50 = vld [vmem:[#allocation3 + $0x308] sm:$0xff]  ;;  %v54_v52 = vld [vmem:[%s2944_s0 + $0x60] sm:$0xff]  ;;  %v2063_v55 = vpack.c.bf16 %v626_v49, %v622_v48  ;;  %v625_v57 = vld [vmem:[#allocation3 + $0x2f0] sm:$0xff] }
  0x40   :  { %418 = vmatprep.mubr.f32.mxu1 %v2309_v1  ;;  %2050 = vmatpush1.bf16.msra.mxu1 %v2049_v14  ;;  %v1939_v59 = vpack.c.bf16 %v632_v51, %v628_v50  ;;  %v631_v60 = vld [vmem:[#allocation3 + $0x320] sm:$0xff]  ;;  %v630_v61 = vld [vmem:[#allocation3 + $0x318] sm:$0xff]  ;;  %v640_v0 = vld [vmem:[#allocation3 + $0x368] sm:$0xff]  ;;  %v2065_v3 = vpack.c.bf16 %v625_v57, %v621_v56  ;;  %v76_v50 = vlaneseq }
  0x41   :  { %1851 = vmatmul.mubr.msk.f32.gmra.mrb[16].mxu0 %vm96_vm0, %v50_v63  ;;  %2052 = vmatprep.subr.bf16.mxu1 %v2051_v16  ;;  %v634_v62 = vld [vmem:[#allocation3 + $0x338] sm:$0xff]  ;;  %v55_v2 = vld [vmem:[%s2944_s0 + $0x68] sm:$0xff]  ;;  %v1941_v4 = vpack.c.bf16 %v631_v60, %v627_v58  ;;  %v629_v6 = vld [vmem:[#allocation3 + $0x310] sm:$0xff] }
  0x42   :  { %263 = vmatprep.mubr.f32.mxu0 %v2309_v1  ;;  %1926 = vmatpush1.bf16.msra.mxu0 %v1925_v15  ;;  %v2067_v5 = vpack.c.bf16 %v634_v62, %v630_v61  ;;  %v633_v7 = vld [vmem:[#allocation3 + $0x330] sm:$0xff]  ;;  %v635_v8 = vld [vmem:[#allocation3 + $0x340] sm:$0xff]  ;;  %v638_v11 = vld [vmem:[#allocation3 + $0x358] sm:$0xff]  ;;  %v2531_v51 = vshrl.u32 %v76_v50, 7 }
  0x43   :  { %1867 = vmatmul.mubr.msk.f32.gmra.mrb[16].mxu1 %vm96_vm0, %v50_v63  ;;  %1928 = vmatprep.subr.bf16.mxu0 %v1927_v20  ;;  %v636_v63 = vld [vmem:[#allocation3 + $0x348] sm:$0xff]  ;;  %v639_v10 = vld [vmem:[#allocation3 + $0x360] sm:$0xff]  ;;  %v642_v12 = vld [vmem:[#allocation3 + $0x378] sm:$0xff]  ;;  %v2069_v16 = vpack.c.bf16 %v633_v7, %v629_v6 }
  0x44   :  { %424 = vmatprep.mubr.f32.mxu1 %v2309_v1  ;;  %2054 = vmatpush1.bf16.msra.mxu1 %v2053_v27  ;;  %v1943_v9 = vpack.c.bf16 %v640_v0, %v636_v63  ;;  %v648_v14 = vld [vmem:[#allocation3 + $0x3a8] sm:$0xff]  ;;  %v1945_v17 = vpack.c.bf16 %v639_v10, %v635_v8  ;;  %v2071_v18 = vpack.c.bf16 %v642_v12, %v638_v11  ;;  %v637_v19 = vld [vmem:[#allocation3 + $0x350] sm:$0xff]  ;;  %v643_v21 = vld [vmem:[#allocation3 + $0x380] sm:$0xff] }
  0x45   :  { %1852 = vmatmul.mubr.msk.f32.gmra.mrb[18].mxu0 %vm96_vm0, %v51_v13  ;;  %2056 = vmatprep.subr.bf16.mxu1 %v2055_v29  ;;  %v56_v15 = vld [vmem:[%s2944_s0 + $0x70] sm:$0xff]  ;;  %v647_v23 = vld [vmem:[#allocation3 + $0x3a0] sm:$0xff]  ;;  %v646_v24 = vld [vmem:[#allocation3 + $0x398] sm:$0xff] }
  0x46   :  { %269 = vmatprep.mubr.f32.mxu0 %v2309_v1  ;;  %1930 = vmatpush1.bf16.msra.mxu0 %v1929_v28  ;;  %v641_v20 = vld [vmem:[#allocation3 + $0x370] sm:$0xff]  ;;  %v650_v25 = vld [vmem:[#allocation3 + $0x3b8] sm:$0xff]  ;;  %v1949_v28 = vpack.c.bf16 %v647_v23, %v643_v21  ;;  %v656_v34 = vld [vmem:[#allocation3 + $0x3e8] sm:$0xff] }
  0x47   :  { %1868 = vmatmul.mubr.msk.f32.gmra.mrb[18].mxu1 %vm96_vm0, %v51_v13  ;;  %1932 = vmatprep.subr.bf16.mxu0 %v1931_v33  ;;  %v644_v13 = vld [vmem:[#allocation3 + $0x388] sm:$0xff]  ;;  %v2073_v27 = vpack.c.bf16 %v641_v20, %v637_v19  ;;  %v2075_v29 = vpack.c.bf16 %v650_v25, %v646_v24  ;;  %v645_v30 = vld [vmem:[#allocation3 + $0x390] sm:$0xff]  ;;  %v654_v35 = vld [vmem:[#allocation3 + $0x3d8] sm:$0xff] }
  0x48   :  { %430 = vmatprep.mubr.f32.mxu1 %v2309_v1  ;;  %2058 = vmatpush1.bf16.msra.mxu1 %v2057_v40  ;;  %v1947_v22 = vpack.c.bf16 %v648_v14, %v644_v13  ;;  %v649_v31 = vld [vmem:[#allocation3 + $0x3b0] sm:$0xff]  ;;  %v652_v33 = vld [vmem:[#allocation3 + $0x3c8] sm:$0xff]  ;;  %v651_v37 = vld [vmem:[#allocation3 + $0x3c0] sm:$0xff] }
  0x49   :  { %1853 = vmatmul.mubr.msk.f32.gmra.mrb[20].mxu0 %vm96_vm0, %v52_v26  ;;  %2060 = vmatprep.subr.bf16.mxu1 %v2059_v42  ;;  %v2077_v32 = vpack.c.bf16 %v649_v31, %v645_v30  ;;  %v1951_v36 = vpack.c.bf16 %v656_v34, %v652_v33  ;;  %v655_v38 = vld [vmem:[#allocation3 + $0x3e0] sm:$0xff]  ;;  %v653_v42 = vld [vmem:[#allocation3 + $0x3d0] sm:$0xff]  ;;  %v664_v45 = vld [vmem:[#allocation3 + $0x428] sm:$0xff] }
  0x4a   :  { %275 = vmatprep.mubr.f32.mxu0 %v2309_v1  ;;  %1934 = vmatpush1.bf16.msra.mxu0 %v1933_v41  ;;  %v1953_v40 = vpack.c.bf16 %v655_v38, %v651_v37  ;;  %v657_v43 = vld [vmem:[#allocation3 + $0x3f0] sm:$0xff]  ;;  %v666_v48 = vld [vmem:[#allocation3 + $0x438] sm:$0xff]  ;;  %v659_v58 = vld [vmem:[#allocation3 + $0x400] sm:$0xff] }
  0x4b   :  { %1869 = vmatmul.mubr.msk.f32.gmra.mrb[20].mxu1 %vm96_vm0, %v52_v26  ;;  %1936 = vmatprep.subr.bf16.mxu0 %v1935_v46  ;;  %v57_v26 = vld [vmem:[%s2944_s0 + $0x78] sm:$0xff]  ;;  %v2081_v44 = vpack.c.bf16 %v657_v43, %v653_v42  ;;  %v668_v0 = vld [vmem:[#allocation3 + $0x448] sm:$0xff]  ;;  %v667_v10 = vld [vmem:[#allocation3 + $0x440] sm:$0xff] }
  0x4c   :  { %436 = vmatprep.mubr.f32.mxu1 %v2309_v1  ;;  %2062 = vmatpush1.bf16.msra.mxu1 %v2061_v53  ;;  %v662_v46 = vld [vmem:[#allocation3 + $0x418] sm:$0xff]  ;;  %v661_v62 = vld [vmem:[#allocation3 + $0x410] sm:$0xff]  ;;  %v671_v11 = vld [vmem:[#allocation3 + $0x460] sm:$0xff] }
  0x4d   :  { %1854 = vmatmul.mubr.msk.f32.gmra.mrb[22].mxu0 %vm96_vm0, %v53_v39  ;;  %2064 = vmatprep.subr.bf16.mxu1 %v2063_v55  ;;  %v2083_v49 = vpack.c.bf16 %v666_v48, %v662_v46  ;;  %v2539_v53 = vld [vmem:[%s2946_s2] sm:$0xf]  ;;  %v665_v63 = vld [vmem:[#allocation3 + $0x430] sm:$0xff]  ;;  %v676_v19 = vld [vmem:[#allocation3 + $0x488] sm:$0xff] }
  0x4e   :  { %281 = vmatprep.mubr.f32.mxu0 %v2309_v1  ;;  %1938 = vmatpush1.bf16.msra.mxu0 %v1937_v54  ;;  %v2542_v54 = vsub.s32 1, %v2531_v51  ;;  %v680_v21 = vld [vmem:[#allocation3 + $0x4a8] sm:$0xff]  ;;  %v682_v23 = vld [vmem:[#allocation3 + $0x4b8] sm:$0xff]  ;;  %v679_v30 = vld [vmem:[#allocation3 + $0x4a0] sm:$0xff] }
  0x4f   :  { %1870 = vmatmul.mubr.msk.f32.gmra.mrb[22].mxu1 %vm96_vm0, %v53_v39  ;;  %1940 = vmatprep.subr.bf16.mxu0 %v1939_v59  ;;  %v658_v39 = vld [vmem:[#allocation3 + $0x3f8] sm:$0xff]  ;;  %v663_v59 = vld [vmem:[#allocation3 + $0x420] sm:$0xff]  ;;  %v677_v37 = vld [vmem:[#allocation3 + $0x490] sm:$0xff] }
  0x50   :  { %442 = vmatprep.mubr.f32.mxu1 %v2309_v1  ;;  %2066 = vmatpush1.bf16.msra.mxu1 %v2065_v3  ;;  %v2079_v41 = vpack.c.bf16 %v658_v39, %v654_v35  ;;  %v2550_v56 = vrot.slane %v2539_v53, %v2542_v54  ;;  %v672_v3 = vld [vmem:[#allocation3 + $0x468] sm:$0xff]  ;;  %v1957_v8 = vpack.c.bf16 %v663_v59, %v659_v58  ;;  %v681_v38 = vld [vmem:[#allocation3 + $0x4b0] sm:$0xff]  ;;  %v686_v42 = vld [vmem:[#allocation3 + $0x4d8] sm:$0xff] }
  0x51   :  { %1855 = vmatmul.mubr.msk.f32.gmra.mrb[24].mxu0 %vm96_vm0, %v54_v52  ;;  %2068 = vmatprep.subr.bf16.mxu1 %v2067_v5  ;;  %v674_v5 = vld [vmem:[#allocation3 + $0x478] sm:$0xff]  ;;  %v1963_v35 = vpack.c.bf16 %v680_v21, %v676_v19  ;;  %v684_v39 = vld [vmem:[#allocation3 + $0x4c8] sm:$0xff]  ;;  %v683_v48 = vld [vmem:[#allocation3 + $0x4c0] sm:$0xff] }
  0x52   :  { %287 = vmatprep.mubr.f32.mxu0 %v2309_v1  ;;  %1942 = vmatpush1.bf16.msra.mxu0 %v1941_v4  ;;  %v670_v4 = vld [vmem:[#allocation3 + $0x458] sm:$0xff]  ;;  %v697_v21 = vld [vmem:[#allocation3 + $0x530] sm:$0xff] }
  0x53   :  { %1871 = vmatmul.mubr.msk.f32.gmra.mrb[24].mxu1 %vm96_vm0, %v54_v52  ;;  %1944 = vmatprep.subr.bf16.mxu0 %v1943_v9  ;;  %v2534_v52 = vsub.s32 0, %v2531_v51  ;;  %v2085_v9 = vpack.c.bf16 %v665_v63, %v661_v62  ;;  %v690_v43 = vld [vmem:[#allocation3 + $0x4f8] sm:$0xff]  ;;  %v685_v63 = vld [vmem:[#allocation3 + $0x4d0] sm:$0xff] }
  0x54   :  { %448 = vmatprep.mubr.f32.mxu1 %v2309_v1  ;;  %2070 = vmatpush1.bf16.msra.mxu1 %v2069_v16  ;;  %v2087_v16 = vpack.c.bf16 %v674_v5, %v670_v4  ;;  %v2095_v62 = vpack.c.bf16 %v690_v43, %v686_v42  ;;  %v696_v4 = vld [vmem:[#allocation3 + $0x528] sm:$0xff]  ;;  %v694_v5 = vld [vmem:[#allocation3 + $0x518] sm:$0xff]  ;;  %v701_v42 = vld [vmem:[#allocation3 + $0x550] sm:$0xff] }
  0x55   :  { %1856 = vmatmul.mubr.msk.f32.gmra.mrb[26].mxu0 %vm96_vm0, %v55_v2  ;;  %2072 = vmatprep.subr.bf16.mxu1 %v2071_v18  ;;  %v2546_v55 = vrot.slane %v2539_v53, %v2534_v52  ;;  %v673_v18 = vld [vmem:[#allocation3 + $0x470] sm:$0xff] }
  0x56   :  { %293 = vmatprep.mubr.f32.mxu0 %v2309_v1  ;;  %1946 = vmatpush1.bf16.msra.mxu0 %v1945_v17  ;;  %v669_v17 = vld [vmem:[#allocation3 + $0x450] sm:$0xff] }
  0x57   :  { %1872 = vmatmul.mubr.msk.f32.gmra.mrb[26].mxu1 %vm96_vm0, %v55_v2  ;;  %1948 = vmatprep.subr.bf16.mxu0 %v1947_v22  ;;  %v678_v22 = vld [vmem:[#allocation3 + $0x498] sm:$0xff]  ;;  %v705_v43 = vld [vmem:[#allocation3 + $0x570] sm:$0xff] }
  0x58   :  { %454 = vmatprep.mubr.f32.mxu1 %v2309_v1  ;;  %2074 = vmatpush1.bf16.msra.mxu1 %v2073_v27  ;;  %v1961_v27 = vpack.c.bf16 %v671_v11, %v667_v10 }
  0x59   :  { %1857 = vmatmul.mubr.msk.f32.gmra.mrb[28].mxu0 %vm96_vm0, %v56_v15  ;;  %2076 = vmatprep.subr.bf16.mxu1 %v2075_v29  ;;  %v675_v29 = vld [vmem:[#allocation3 + $0x480] sm:$0xff] }
  0x5a   :  { %299 = vmatprep.mubr.f32.mxu0 %v2309_v1  ;;  %1950 = vmatpush1.bf16.msra.mxu0 %v1949_v28  ;;  %v2089_v28 = vpack.c.bf16 %v673_v18, %v669_v17  ;;  %v1965_v46 = vpack.c.bf16 %v679_v30, %v675_v29 }
  0x5b   :  { %1873 = vmatmul.mubr.msk.f32.gmra.mrb[28].mxu1 %vm96_vm0, %v56_v15  ;;  %1952 = vmatprep.subr.bf16.mxu0 %v1951_v36  ;;  %v1959_v15 = vpack.c.bf16 %v672_v3, %v668_v0  ;;  %v2091_v36 = vpack.c.bf16 %v682_v23, %v678_v22  ;;  %v689_v0 = vld [vmem:[#allocation3 + $0x4f0] sm:$0xff]  ;;  %v700_v22 = vld [vmem:[#allocation3 + $0x548] sm:$0xff] }
  0x5c   :  { %460 = vmatprep.mubr.f32.mxu1 %v2309_v1  ;;  %2078 = vmatpush1.bf16.msra.mxu1 %v2077_v32  ;;  %v660_v1 = vld [vmem:[#allocation3 + $0x408] sm:$0xff]  ;;  %v2097_v11 = vpack.c.bf16 %v689_v0, %v685_v63  ;;  %v711_v63 = vld [vmem:[#allocation3 + $0x5a0] sm:$0xff] }
  0x5d   :  { %1858 = vmatmul.mubr.msk.f32.gmra.mrb[30].mxu0 %vm96_vm0, %v57_v26  ;;  %2080 = vmatprep.subr.bf16.mxu1 %v2079_v41  ;;  %v1955_v47 = vpack.c.bf16 %v664_v45, %v660_v1  ;;  %v688_v41 = vld [vmem:[#allocation3 + $0x4e8] sm:$0xff] }
  0x5e   :  { %1954 = vmatpush1.bf16.msra.mxu0 %v1953_v40 }
  0x5f   :  { %1874 = vmatmul.mubr.msk.f32.gmra.mrb[30].mxu1 %vm96_vm0, %v57_v26  ;;  %1956 = vmatprep.subr.bf16.mxu0 %v1955_v47  ;;  %v2093_v47 = vpack.c.bf16 %v681_v38, %v677_v37 }
  0x60   :  { %2082 = vmatpush1.bf16.msra.mxu1 %v2081_v44 }
  0x61   :  { %2084 = vmatprep.subr.bf16.mxu1 %v2083_v49  ;;  %v687_v49 = vld [vmem:[#allocation3 + $0x4e0] sm:$0xff] }
  0x62   :  { %v1969_v10 = vpack.c.bf16 %v687_v49, %v683_v48  ;;  %v714_v48 = vld [vmem:[#allocation3 + $0x5b8] sm:$0xff] }
  0xf4   :  { %v211_v57 = vpop.f32.mrb[0].mxu0 }
  0xf5   :  { %v212_v60 = vadd.f32 %v211_v57, %v2546_v55  ;;  %v213_v61 = vpop.f32.mrb[1].mxu0 }
  0xf6   :  { %v214_v2 = vadd.f32 %v213_v61, %v2550_v56  ;;  %v2556_v24 = vpop.f32.mrb[0].mxu1  ;;  %v1967_v61 = vpack.c.bf16 %v688_v41, %v684_v39 }
  0xf7   :  { %v467_v12 = vmax.f32 %v212_v60, 0.0  ;;  %v2558_v31 = vpop.f32.mrb[1].mxu1 }
  0xf8   :  { %v468_v6 = vmax.f32 %v214_v2, 0.0  ;;  %v217_v7 = vpop.f32.mrb[2].mxu0  ;;  %v692_v2 = vld [vmem:[#allocation3 + $0x508] sm:$0xff] }
  0xf9   :  { %v218_v13 = vadd.f32 %v217_v7, %v2546_v55  ;;  %v219_v14 = vpop.f32.mrb[3].mxu0  ;;  %v1971_v18 = vpack.c.bf16 %v696_v4, %v692_v2 }
  0xfa   :  { %v220_v20 = vadd.f32 %v219_v14, %v2550_v56  ;;  %873 = vmatprep.mubr.f32.mxu0 %v468_v6  ;;  %1195 = vmatprep.mubr.f32.mxu1 %v468_v6  ;;  %v2562_v44 = vpop.f32.mrb[2].mxu1  ;;  %v698_v6 = vld [vmem:[#allocation3 + $0x538] sm:$0xff] }
  0xfb   :  { %874 = vmatmul.mubr.f32.vlgmr.msra.gmra.mrb[32].mxu0 %v467_v12  ;;  %1196 = vmatmul.mubr.f32.vlgmr.msra.gmra.mrb[32].mxu1 %v467_v12  ;;  %v471_v32 = vmax.f32 %v218_v13, 0.0  ;;  %v2564_v57 = vpop.f32.mrb[3].mxu1  ;;  %v691_v12 = vld [vmem:[#allocation3 + $0x500] sm:$0xff]  ;;  %v2099_v19 = vpack.c.bf16 %v698_v6, %v694_v5 }
  0xfc   :  { %v472_v25 = vmax.f32 %v220_v20, 0.0  ;;  %1958 = vmatpush1.bf16.msra.mxu0 %v1957_v8  ;;  %v223_v26 = vpop.f32.mrb[4].mxu0  ;;  %2086 = vmatpush1.bf16.msra.mxu1 %v2085_v9  ;;  %v695_v13 = vld [vmem:[#allocation3 + $0x520] sm:$0xff]  ;;  %v693_v20 = vld [vmem:[#allocation3 + $0x510] sm:$0xff] }
  0xfd   :  { %v224_v33 = vadd.f32 %v223_v26, %v2546_v55  ;;  %v225_v34 = vpop.f32.mrb[5].mxu0  ;;  %1960 = vmatprep.subr.bf16.mxu0 %v1959_v15  ;;  %2088 = vmatprep.subr.bf16.mxu1 %v2087_v16  ;;  %v702_v26 = vld [vmem:[#allocation3 + $0x558] sm:$0xff] }
  0xfe   :  { %v226_v40 = vadd.f32 %v225_v34, %v2550_v56  ;;  %879 = vmatprep.mubr.f32.mxu0 %v472_v25  ;;  %1201 = vmatprep.mubr.f32.mxu1 %v472_v25  ;;  %v2568_v7 = vpop.f32.mrb[4].mxu1  ;;  %v704_v25 = vld [vmem:[#allocation3 + $0x568] sm:$0xff]  ;;  %v699_v34 = vld [vmem:[#allocation3 + $0x540] sm:$0xff] }
  0xff   :  { %880 = vmatmul.mubr.f32.gmra.mrb[34].mxu0 %v471_v32  ;;  %1202 = vmatmul.mubr.f32.gmra.mrb[34].mxu1 %v471_v32  ;;  %v475_v58 = vmax.f32 %v224_v33, 0.0  ;;  %v2570_v14 = vpop.f32.mrb[5].mxu1  ;;  %v1973_v32 = vpack.c.bf16 %v695_v13, %v691_v12  ;;  %v2101_v33 = vpack.c.bf16 %v697_v21, %v693_v20  ;;  %v720_v12 = vld [vmem:[#allocation3 + $0x5e8] sm:$0xff]  ;;  %v718_v13 = vld [vmem:[#allocation3 + $0x5d8] sm:$0xff]  ;;  %v715_v21 = vld [vmem:[#allocation3 + $0x5c0] sm:$0xff] }
 0x100   :  { %v476_v1 = vmax.f32 %v226_v40, 0.0  ;;  %1962 = vmatpush1.bf16.msra.mxu0 %v1961_v27  ;;  %v229_v45 = vpop.f32.mrb[6].mxu0  ;;  %2090 = vmatpush1.bf16.msra.mxu1 %v2089_v28  ;;  %v706_v27 = vld [vmem:[#allocation3 + $0x578] sm:$0xff]  ;;  %v1975_v40 = vpack.c.bf16 %v704_v25, %v700_v22  ;;  %v719_v22 = vld [vmem:[#allocation3 + $0x5e0] sm:$0xff] }
 0x101   :  { %v230_v59 = vadd.f32 %v229_v45, %v2546_v55  ;;  %v231_v60 = vpop.f32.mrb[7].mxu0  ;;  %1964 = vmatprep.subr.bf16.mxu0 %v1963_v35  ;;  %2092 = vmatprep.subr.bf16.mxu1 %v2091_v36  ;;  %v703_v35 = vld [vmem:[#allocation3 + $0x560] sm:$0xff]  ;;  %v2103_v41 = vpack.c.bf16 %v706_v27, %v702_v26 }
 0x102   :  { %v232_v3 = vadd.f32 %v231_v60, %v2550_v56  ;;  %885 = vmatprep.mubr.f32.mxu0 %v476_v1  ;;  %1207 = vmatprep.mubr.f32.mxu1 %v476_v1  ;;  %v2574_v28 = vpop.f32.mrb[6].mxu1  ;;  %v708_v1 = vld [vmem:[#allocation3 + $0x588] sm:$0xff]  ;;  %v1977_v60 = vpack.c.bf16 %v703_v35, %v699_v34 }
 0x103   :  { %886 = vmatmul.mubr.f32.gmra.mrb[36].mxu0 %v475_v58  ;;  %1208 = vmatmul.mubr.f32.gmra.mrb[36].mxu1 %v475_v58  ;;  %v479_v15 = vmax.f32 %v230_v59, 0.0  ;;  %v2576_v36 = vpop.f32.mrb[7].mxu1  ;;  %v724_v34 = vld [vmem:[#allocation3 + $0x608] sm:$0xff] }
 0x104   :  { %v480_v8 = vmax.f32 %v232_v3, 0.0  ;;  %1966 = vmatpush1.bf16.msra.mxu0 %v1965_v46  ;;  %v235_v9 = vpop.f32.mrb[8].mxu0  ;;  %2094 = vmatpush1.bf16.msra.mxu1 %v2093_v47  ;;  %v712_v46 = vld [vmem:[#allocation3 + $0x5a8] sm:$0xff]  ;;  %v710_v47 = vld [vmem:[#allocation3 + $0x598] sm:$0xff] }
 0x105   :  { %v236_v16 = vadd.f32 %v235_v9, %v2546_v55  ;;  %v237_v17 = vpop.f32.mrb[9].mxu0  ;;  %1968 = vmatprep.subr.bf16.mxu0 %v1967_v61  ;;  %2096 = vmatprep.subr.bf16.mxu1 %v2095_v62  ;;  %v2105_v61 = vpack.c.bf16 %v705_v43, %v701_v42  ;;  %v707_v62 = vld [vmem:[#allocation3 + $0x580] sm:$0xff]  ;;  %v1979_v5 = vpack.c.bf16 %v712_v46, %v708_v1  ;;  %v713_v9 = vld [vmem:[#allocation3 + $0x5b0] sm:$0xff] }
 0x106   :  { %v238_v23 = vadd.f32 %v237_v17, %v2550_v56  ;;  %891 = vmatprep.mubr.f32.mxu0 %v480_v8  ;;  %1213 = vmatprep.mubr.f32.mxu1 %v480_v8  ;;  %v2580_v49 = vpop.f32.mrb[8].mxu1  ;;  %v2107_v6 = vpack.c.bf16 %v714_v48, %v710_v47  ;;  %v709_v8 = vld [vmem:[#allocation3 + $0x590] sm:$0xff]  ;;  %v1985_v43 = vpack.c.bf16 %v719_v22, %v715_v21  ;;  %v727_v46 = vld [vmem:[#allocation3 + $0x620] sm:$0xff] }
 0x107   :  { %892 = vmatmul.mubr.f32.gmra.mrb[38].mxu0 %v479_v15  ;;  %1214 = vmatmul.mubr.f32.gmra.mrb[38].mxu1 %v479_v15  ;;  %v483_v37 = vmax.f32 %v236_v16, 0.0  ;;  %v2582_v0 = vpop.f32.mrb[9].mxu1  ;;  %v722_v15 = vld [vmem:[#allocation3 + $0x5f8] sm:$0xff]  ;;  %v2109_v20 = vpack.c.bf16 %v713_v9, %v709_v8 }
 0x108   :  { %v484_v29 = vmax.f32 %v238_v23, 0.0  ;;  %1970 = vmatpush1.bf16.msra.mxu0 %v1969_v10  ;;  %v241_v30 = vpop.f32.mrb[10].mxu0  ;;  %2098 = vmatpush1.bf16.msra.mxu1 %v2097_v11  ;;  %v716_v10 = vld [vmem:[#allocation3 + $0x5c8] sm:$0xff] }
 0x109   :  { %v242_v38 = vadd.f32 %v241_v30, %v2546_v55  ;;  %v243_v39 = vpop.f32.mrb[11].mxu0  ;;  %1972 = vmatprep.subr.bf16.mxu0 %v1971_v18  ;;  %2100 = vmatprep.subr.bf16.mxu1 %v2099_v19  ;;  %v1981_v19 = vpack.c.bf16 %v711_v63, %v707_v62  ;;  %v2111_v30 = vpack.c.bf16 %v722_v15, %v718_v13  ;;  %v725_v62 = vld [vmem:[#allocation3 + $0x610] sm:$0xff]  ;;  %v731_v13 = vld [vmem:[#allocation3 + $0x640] sm:$0xff] }
 0x10a   :  { %v244_v45 = vadd.f32 %v243_v39, %v2550_v56  ;;  %897 = vmatprep.mubr.f32.mxu0 %v484_v29  ;;  %1219 = vmatprep.mubr.f32.mxu1 %v484_v29  ;;  %v2586_v16 = vpop.f32.mrb[10].mxu1  ;;  %v1983_v29 = vpack.c.bf16 %v720_v12, %v716_v10  ;;  %v730_v39 = vld [vmem:[#allocation3 + $0x638] sm:$0xff]  ;;  %v729_v63 = vld [vmem:[#allocation3 + $0x630] sm:$0xff]  ;;  %v735_v15 = vld [vmem:[#allocation3 + $0x660] sm:$0xff] }
 0x10b   :  { %898 = vmatmul.mubr.f32.gmra.mrb[40].mxu0 %v483_v37  ;;  %1220 = vmatmul.mubr.f32.gmra.mrb[40].mxu1 %v483_v37  ;;  %v487_v2 = vmax.f32 %v242_v38, 0.0  ;;  %v2588_v23 = vpop.f32.mrb[11].mxu1  ;;  %v728_v37 = vld [vmem:[#allocation3 + $0x628] sm:$0xff]  ;;  %v726_v38 = vld [vmem:[#allocation3 + $0x618] sm:$0xff]  ;;  %v2117_v12 = vpack.c.bf16 %v729_v63, %v725_v62 }
 0x10c   :  { %v488_v58 = vmax.f32 %v244_v45, 0.0  ;;  %1974 = vmatpush1.bf16.msra.mxu0 %v1973_v32  ;;  %v247_v59 = vpop.f32.mrb[12].mxu0  ;;  %2102 = vmatpush1.bf16.msra.mxu1 %v2101_v33  ;;  %v717_v32 = vld [vmem:[#allocation3 + $0x5d0] sm:$0xff]  ;;  %v723_v45 = vld [vmem:[#allocation3 + $0x600] sm:$0xff]  ;;  %v752_v63 = vld [vmem:[#allocation3 + $0x6e8] sm:$0xff] }
 0x10d   :  { %v248_v3 = vadd.f32 %v247_v59, %v2546_v55  ;;  %v249_v4 = vpop.f32.mrb[13].mxu0  ;;  %1976 = vmatprep.subr.bf16.mxu0 %v1975_v40  ;;  %2104 = vmatprep.subr.bf16.mxu1 %v2103_v41  ;;  %v721_v33 = vld [vmem:[#allocation3 + $0x5f0] sm:$0xff] }
 0x10e   :  { %v250_v11 = vadd.f32 %v249_v4, %v2550_v56  ;;  %903 = vmatprep.mubr.f32.mxu0 %v488_v58  ;;  %1225 = vmatprep.mubr.f32.mxu1 %v488_v58  ;;  %v2592_v40 = vpop.f32.mrb[12].mxu1  ;;  %v2113_v1 = vpack.c.bf16 %v721_v33, %v717_v32  ;;  %v736_v4 = vld [vmem:[#allocation3 + $0x668] sm:$0xff]  ;;  %v742_v32 = vld [vmem:[#allocation3 + $0x698] sm:$0xff] }
 0x10f   :  { %904 = vmatmul.mubr.f32.gmra.mrb[42].mxu0 %v487_v2  ;;  %1226 = vmatmul.mubr.f32.gmra.mrb[42].mxu1 %v487_v2  ;;  %v491_v25 = vmax.f32 %v248_v3, 0.0  ;;  %v2594_v47 = vpop.f32.mrb[13].mxu1  ;;  %v732_v2 = vld [vmem:[#allocation3 + $0x648] sm:$0xff]  ;;  %v746_v33 = vld [vmem:[#allocation3 + $0x6b8] sm:$0xff] }
 0x110   :  { %v492_v17 = vmax.f32 %v250_v11, 0.0  ;;  %1978 = vmatpush1.bf16.msra.mxu0 %v1977_v60  ;;  %v253_v18 = vpop.f32.mrb[14].mxu0  ;;  %2106 = vmatpush1.bf16.msra.mxu1 %v2105_v61  ;;  %v1987_v60 = vpack.c.bf16 %v728_v37, %v724_v34  ;;  %v2115_v61 = vpack.c.bf16 %v730_v39, %v726_v38  ;;  %v1989_v11 = vpack.c.bf16 %v727_v46, %v723_v45 }
 0x111   :  { %v254_v26 = vadd.f32 %v253_v18, %v2546_v55  ;;  %v255_v27 = vpop.f32.mrb[15].mxu0  ;;  %1980 = vmatprep.subr.bf16.mxu0 %v1979_v5  ;;  %2108 = vmatprep.subr.bf16.mxu1 %v2107_v6  ;;  %v734_v5 = vld [vmem:[#allocation3 + $0x658] sm:$0xff]  ;;  %v1991_v21 = vpack.c.bf16 %v736_v4, %v732_v2  ;;  %v1993_v38 = vpack.c.bf16 %v735_v15, %v731_v13 }
 0x112   :  { %v256_v35 = vadd.f32 %v255_v27, %v2550_v56  ;;  %909 = vmatprep.mubr.f32.mxu0 %v492_v17  ;;  %1231 = vmatprep.mubr.f32.mxu1 %v492_v17  ;;  %v738_v6 = vld [vmem:[#allocation3 + $0x678] sm:$0xff]  ;;  %v2598_v8 = vpop.f32.mrb[14].mxu1  ;;  %v740_v27 = vld [vmem:[#allocation3 + $0x688] sm:$0xff] }
 0x113   :  { %910 = vmatmul.mubr.f32.gmra.mrb[44].mxu0 %v491_v25  ;;  %1232 = vmatmul.mubr.f32.gmra.mrb[44].mxu1 %v491_v25  ;;  %v495_v48 = vmax.f32 %v254_v26, 0.0  ;;  %v2600_v17 = vpop.f32.mrb[15].mxu1  ;;  %v2119_v22 = vpack.c.bf16 %v738_v6, %v734_v5  ;;  %v733_v25 = vld [vmem:[#allocation3 + $0x650] sm:$0xff]  ;;  %v750_v2 = vld [vmem:[#allocation3 + $0x6d8] sm:$0xff] }
 0x114   :  { %v496_v41 = vmax.f32 %v256_v35, 0.0  ;;  %1982 = vmatpush1.bf16.msra.mxu0 %v1981_v19  ;;  %v259_v42 = vpop.f32.mrb[16].mxu0  ;;  %2110 = vmatpush1.bf16.msra.mxu1 %v2109_v20  ;;  %v737_v26 = vld [vmem:[#allocation3 + $0x670] sm:$0xff] }
 0x115   :  { %v260_v58 = vadd.f32 %v259_v42, %v2546_v55  ;;  %v261_v59 = vpop.f32.mrb[17].mxu0  ;;  %1984 = vmatprep.subr.bf16.mxu0 %v1983_v29  ;;  %2112 = vmatprep.subr.bf16.mxu1 %v2111_v30  ;;  %v744_v30 = vld [vmem:[#allocation3 + $0x6a8] sm:$0xff]  ;;  %v2121_v39 = vpack.c.bf16 %v737_v26, %v733_v25  ;;  %v743_v42 = vld [vmem:[#allocation3 + $0x6a0] sm:$0xff]  ;;  %v753_v25 = vld [vmem:[#allocation3 + $0x6f0] sm:$0xff] }
 0x116   :  { %v262_v3 = vadd.f32 %v261_v59, %v2550_v56  ;;  %915 = vmatprep.mubr.f32.mxu0 %v496_v41  ;;  %1237 = vmatprep.mubr.f32.mxu1 %v496_v41  ;;  %v2604_v34 = vpop.f32.mrb[16].mxu1  ;;  %v739_v41 = vld [vmem:[#allocation3 + $0x680] sm:$0xff]  ;;  %v741_v59 = vld [vmem:[#allocation3 + $0x690] sm:$0xff]  ;;  %v756_v26 = vld [vmem:[#allocation3 + $0x708] sm:$0xff] }
 0x117   :  { %916 = vmatmul.mubr.f32.gmra.mrb[46].mxu0 %v495_v48  ;;  %1238 = vmatmul.mubr.f32.gmra.mrb[46].mxu1 %v495_v48  ;;  %v499_v18 = vmax.f32 %v260_v58, 0.0  ;;  %v1995_v48 = vpack.c.bf16 %v744_v30, %v740_v27  ;;  %v2123_v58 = vpack.c.bf16 %v746_v33, %v742_v32  ;;  %v758_v30 = vld [vmem:[#allocation3 + $0x718] sm:$0xff] }
 0x118   :  { %v500_v9 = vmax.f32 %v262_v3, 0.0  ;;  %1986 = vmatpush1.bf16.msra.mxu0 %v1985_v43  ;;  %v265_v10 = vpop.f32.mrb[18].mxu0  ;;  %2114 = vmatpush1.bf16.msra.mxu1 %v2113_v1  ;;  %v2606_v43 = vpop.f32.mrb[17].mxu1  ;;  %v754_v3 = vld [vmem:[#allocation3 + $0x6f8] sm:$0xff] }
 0x119   :  { %v266_v19 = vadd.f32 %v265_v10, %v2546_v55  ;;  %v267_v20 = vpop.f32.mrb[19].mxu0  ;;  %1988 = vmatprep.subr.bf16.mxu0 %v1987_v60  ;;  %2116 = vmatprep.subr.bf16.mxu1 %v2115_v61  ;;  %v745_v60 = vld [vmem:[#allocation3 + $0x6b0] sm:$0xff]  ;;  %v748_v61 = vld [vmem:[#allocation3 + $0x6c8] sm:$0xff]  ;;  %v762_v32 = vld [vmem:[#allocation3 + $0x738] sm:$0xff] }
 0x11a   :  { %v268_v29 = vadd.f32 %v267_v20, %v2550_v56  ;;  %921 = vmatprep.mubr.f32.mxu0 %v500_v9  ;;  %1243 = vmatprep.mubr.f32.mxu1 %v500_v9  ;;  %v2610_v4 = vpop.f32.mrb[18].mxu1  ;;  %v1997_v9 = vpack.c.bf16 %v743_v42, %v739_v41  ;;  %v2125_v10 = vpack.c.bf16 %v745_v60, %v741_v59  ;;  %v755_v41 = vld [vmem:[#allocation3 + $0x700] sm:$0xff] }
 0x11b   :  { %922 = vmatmul.mubr.f32.gmra.mrb[48].mxu0 %v499_v18  ;;  %1244 = vmatmul.mubr.f32.gmra.mrb[48].mxu1 %v499_v18  ;;  %v503_v1 = vmax.f32 %v266_v19, 0.0  ;;  %v2612_v13 = vpop.f32.mrb[19].mxu1  ;;  %v1999_v20 = vpack.c.bf16 %v752_v63, %v748_v61  ;;  %v759_v42 = vld [vmem:[#allocation3 + $0x720] sm:$0xff]  ;;  %v2131_v60 = vpack.c.bf16 %v762_v32, %v758_v30  ;;  %v761_v61 = vld [vmem:[#allocation3 + $0x730] sm:$0xff]  ;;  %v768_v63 = vld [vmem:[#allocation3 + $0x768] sm:$0xff] }
 0x11c   :  { %v504_v35 = vmax.f32 %v268_v29, 0.0  ;;  %1990 = vmatpush1.bf16.msra.mxu0 %v1989_v11  ;;  %v271_v37 = vpop.f32.mrb[20].mxu0  ;;  %2118 = vmatpush1.bf16.msra.mxu1 %v2117_v12  ;;  %v747_v11 = vld [vmem:[#allocation3 + $0x6c0] sm:$0xff]  ;;  %v760_v29 = vld [vmem:[#allocation3 + $0x728] sm:$0xff] }
 0x11d   :  { %v272_v45 = vadd.f32 %v271_v37, %v2546_v55  ;;  %v273_v46 = vpop.f32.mrb[21].mxu0  ;;  %1992 = vmatprep.subr.bf16.mxu0 %v1991_v21  ;;  %2120 = vmatprep.subr.bf16.mxu1 %v2119_v22  ;;  %v751_v12 = vld [vmem:[#allocation3 + $0x6e0] sm:$0xff]  ;;  %v2127_v21 = vpack.c.bf16 %v754_v3, %v750_v2  ;;  %v749_v22 = vld [vmem:[#allocation3 + $0x6d0] sm:$0xff]  ;;  %v2003_v59 = vpack.c.bf16 %v760_v29, %v756_v26  ;;  %v766_v3 = vld [vmem:[#allocation3 + $0x758] sm:$0xff] }
 0x11e   :  { %v274_v62 = vadd.f32 %v273_v46, %v2550_v56  ;;  %927 = vmatprep.mubr.f32.mxu0 %v504_v35  ;;  %1249 = vmatprep.mubr.f32.mxu1 %v504_v35  ;;  %v2616_v33 = vpop.f32.mrb[20].mxu1  ;;  %v769_v29 = vld [vmem:[#allocation3 + $0x770] sm:$0xff]  ;;  %v772_v30 = vld [vmem:[#allocation3 + $0x788] sm:$0xff] }
 0x11f   :  { %928 = vmatmul.mubr.f32.gmra.mrb[50].mxu0 %v503_v1  ;;  %1250 = vmatmul.mubr.f32.gmra.mrb[50].mxu1 %v503_v1  ;;  %v507_v15 = vmax.f32 %v272_v45, 0.0  ;;  %v757_v1 = vld [vmem:[#allocation3 + $0x710] sm:$0xff]  ;;  %v2618_v45 = vpop.f32.mrb[21].mxu1  ;;  %v776_v32 = vld [vmem:[#allocation3 + $0x7a8] sm:$0xff] }
 0x120   :  { %v508_v5 = vmax.f32 %v274_v62, 0.0  ;;  %1994 = vmatpush1.bf16.msra.mxu0 %v1993_v38  ;;  %v277_v6 = vpop.f32.mrb[22].mxu0  ;;  %2122 = vmatpush1.bf16.msra.mxu1 %v2121_v39  ;;  %v2001_v38 = vpack.c.bf16 %v751_v12, %v747_v11  ;;  %v2129_v39 = vpack.c.bf16 %v753_v25, %v749_v22  ;;  %v764_v62 = vld [vmem:[#allocation3 + $0x748] sm:$0xff]  ;;  %v2005_v11 = vpack.c.bf16 %v759_v42, %v755_v41 }
 0x121   :  { %v278_v18 = vadd.f32 %v277_v6, %v2546_v55  ;;  %v279_v19 = vpop.f32.mrb[23].mxu0  ;;  %1996 = vmatprep.subr.bf16.mxu0 %v1995_v48  ;;  %2124 = vmatprep.subr.bf16.mxu1 %v2123_v58  ;;  %v2133_v12 = vpack.c.bf16 %v761_v61, %v757_v1  ;;  %v2632_v41 = vsub.s32 2, %v2531_v51  ;;  %v775_v61 = vld [vmem:[#allocation3 + $0x7a0] sm:$0xff] }
 0x122   :  { %v280_v27 = vadd.f32 %v279_v19, %v2550_v56  ;;  %933 = vmatprep.mubr.f32.mxu0 %v508_v5  ;;  %1255 = vmatprep.mubr.f32.mxu1 %v508_v5  ;;  %v770_v5 = vld [vmem:[#allocation3 + $0x778] sm:$0xff]  ;;  %v2622_v6 = vpop.f32.mrb[22].mxu1  ;;  %v767_v19 = vld [vmem:[#allocation3 + $0x760] sm:$0xff] }
 0x123   :  { %934 = vmatmul.mubr.f32.gmra.mrb[52].mxu0 %v507_v15  ;;  %1256 = vmatmul.mubr.f32.gmra.mrb[52].mxu1 %v507_v15  ;;  %v511_v46 = vmax.f32 %v278_v18, 0.0  ;;  %v2007_v15 = vpack.c.bf16 %v768_v63, %v764_v62  ;;  %v763_v18 = vld [vmem:[#allocation3 + $0x740] sm:$0xff]  ;;  %v773_v62 = vld [vmem:[#allocation3 + $0x790] sm:$0xff] }
 0x124   :  { %v512_v35 = vmax.f32 %v280_v27, 0.0  ;;  %1998 = vmatpush1.bf16.msra.mxu0 %v1997_v9  ;;  %v283_v37 = vpop.f32.mrb[24].mxu0  ;;  %2126 = vmatpush1.bf16.msra.mxu1 %v2125_v10  ;;  %v2135_v27 = vpack.c.bf16 %v770_v5, %v766_v3 }
 0x125   :  { %v284_v48 = vadd.f32 %v283_v37, %v2546_v55  ;;  %v285_v58 = vpop.f32.mrb[25].mxu0  ;;  %2000 = vmatprep.subr.bf16.mxu0 %v1999_v20  ;;  %2128 = vmatprep.subr.bf16.mxu1 %v2127_v21  ;;  %v765_v20 = vld [vmem:[#allocation3 + $0x750] sm:$0xff]  ;;  %v2624_v21 = vpop.f32.mrb[23].mxu1 }
 0x126   :  { %v286_v2 = vadd.f32 %v285_v58, %v2550_v56  ;;  %939 = vmatprep.mubr.f32.mxu0 %v512_v35  ;;  %1261 = vmatprep.mubr.f32.mxu1 %v512_v35  ;;  %v2628_v35 = vsub.s32 3, %v2531_v51  ;;  %v2634_v42 = vpop.f32.mrb[24].mxu1  ;;  %v2137_v58 = vpack.c.bf16 %v769_v29, %v765_v20  ;;  %v782_v20 = vld [vmem:[#allocation3 + $0x7d8] sm:$0xff]  ;;  %v2648_v29 = vrot.slane %v2539_v53, %v2632_v41 }
 0x127   :  { %940 = vmatmul.mubr.f32.gmra.mrb[54].mxu0 %v511_v46  ;;  %1262 = vmatmul.mubr.f32.gmra.mrb[54].mxu1 %v511_v46  ;;  %v515_v22 = vmax.f32 %v284_v48, 0.0  ;;  %v2009_v48 = vpack.c.bf16 %v767_v19, %v763_v18  ;;  %v2636_v63 = vpop.f32.mrb[25].mxu1  ;;  %v784_v18 = vld [vmem:[#allocation3 + $0x7e8] sm:$0xff] }
 0x128   :  { %v516_v9 = vmax.f32 %v286_v2, 0.0  ;;  %2002 = vmatpush1.bf16.msra.mxu0 %v2001_v38  ;;  %v289_v10 = vpop.f32.mrb[26].mxu0  ;;  %2130 = vmatpush1.bf16.msra.mxu1 %v2129_v39  ;;  %v774_v38 = vld [vmem:[#allocation3 + $0x798] sm:$0xff] }
 0x129   :  { %v290_v25 = vadd.f32 %v289_v10, %v2546_v55  ;;  %v291_v26 = vpop.f32.mrb[27].mxu0  ;;  %2004 = vmatprep.subr.bf16.mxu0 %v2003_v59  ;;  %2132 = vmatprep.subr.bf16.mxu1 %v2131_v60  ;;  %v778_v39 = vld [vmem:[#allocation3 + $0x7b8] sm:$0xff]  ;;  %v2011_v59 = vpack.c.bf16 %v776_v32, %v772_v30  ;;  %v771_v60 = vld [vmem:[#allocation3 + $0x780] sm:$0xff]  ;;  %v2641_v10 = vrot.slane %v2539_v53, %v2628_v35 }
 0x12a   :  { %v292_v37 = vadd.f32 %v291_v26, %v2550_v56  ;;  %945 = vmatprep.mubr.f32.mxu0 %v516_v9  ;;  %1267 = vmatprep.mubr.f32.mxu1 %v516_v9  ;;  %v2139_v9 = vpack.c.bf16 %v778_v39, %v774_v38  ;;  %v2644_v26 = vpop.f32.mrb[26].mxu1 }
 0x12b   :  { %946 = vmatmul.mubr.f32.gmra.mrb[56].mxu0 %v515_v22  ;;  %1268 = vmatmul.mubr.f32.gmra.mrb[56].mxu1 %v515_v22  ;;  %v519_v2 = vmax.f32 %v290_v25, 0.0  ;;  %v786_v22 = vld [vmem:[#allocation3 + $0x7f8] sm:$0xff]  ;;  %v2013_v25 = vpack.c.bf16 %v775_v61, %v771_v60  ;;  %v2650_v38 = vpop.f32.mrb[27].mxu1  ;;  %v783_v60 = vld [vmem:[#allocation3 + $0x7e0] sm:$0xff]  ;;  %v781_v61 = vld [vmem:[#allocation3 + $0x7d0] sm:$0xff] }
 0x12c   :  { %v520_v1 = vmax.f32 %v292_v37, 0.0  ;;  %2006 = vmatpush1.bf16.msra.mxu0 %v2005_v11  ;;  %v295_v46 = vpop.f32.mrb[28].mxu0  ;;  %2134 = vmatpush1.bf16.msra.mxu1 %v2133_v12  ;;  %v777_v11 = vld [vmem:[#allocation3 + $0x7b0] sm:$0xff]  ;;  %v780_v12 = vld [vmem:[#allocation3 + $0x7c8] sm:$0xff]  ;;  %v779_v37 = vld [vmem:[#allocation3 + $0x7c0] sm:$0xff] }
 0x12d   :  { %v296_v3 = vadd.f32 %v295_v46, %v2546_v55  ;;  %v297_v5 = vpop.f32.mrb[29].mxu0  ;;  %2008 = vmatprep.subr.bf16.mxu0 %v2007_v15  ;;  %2136 = vmatprep.subr.bf16.mxu1 %v2135_v27  ;;  %v2141_v30 = vpack.c.bf16 %v777_v11, %v773_v62  ;;  %v2015_v32 = vpack.c.bf16 %v784_v18, %v780_v12 }
 0x12e   :  { %v298_v19 = vadd.f32 %v297_v5, %v2550_v56  ;;  %951 = vmatprep.mubr.f32.mxu0 %v520_v1  ;;  %1273 = vmatprep.mubr.f32.mxu1 %v520_v1  ;;  %v2656_v62 = vpop.f32.mrb[28].mxu1 }
 0x12f   :  { %952 = vmatmul.mubr.f32.gmra.mrb[58].mxu0 %v519_v2  ;;  %1274 = vmatmul.mubr.f32.gmra.mrb[58].mxu1 %v519_v2  ;;  %v523_v39 = vmax.f32 %v296_v3, 0.0  ;;  %v785_v2 = vld [vmem:[#allocation3 + $0x7f0] sm:$0xff]  ;;  %v2660_v5 = vpop.f32.mrb[29].mxu1 }
 0x130   :  { %v524_v15 = vmax.f32 %v298_v19, 0.0  ;;  %2010 = vmatpush1.bf16.msra.mxu0 %v2009_v48  ;;  %v301_v27 = vpop.f32.mrb[30].mxu0  ;;  %2138 = vmatpush1.bf16.msra.mxu1 %v2137_v58  ;;  %v375_v48 = vadd.f32 %v2558_v31, %v2641_v10  ;;  %v2143_v58 = vpack.c.bf16 %v786_v22, %v782_v20  ;;  %v2145_v31 = vpack.c.bf16 %v785_v2, %v781_v61 }
 0x131   :  { %v302_v1 = vadd.f32 %v301_v27, %v2546_v55  ;;  %v303_v46 = vpop.f32.mrb[31].mxu0  ;;  %2012 = vmatprep.subr.bf16.mxu0 %v2011_v59  ;;  %2140 = vmatprep.subr.bf16.mxu1 %v2139_v9  ;;  %v2017_v55 = vpack.c.bf16 %v783_v60, %v779_v37  ;;  %v381_v59 = vadd.f32 %v2564_v57, %v2641_v10 }
 0x132   :  { %v304_v53 = vadd.f32 %v303_v46, %v2550_v56  ;;  %957 = vmatprep.mubr.f32.mxu0 %v524_v15  ;;  %1279 = vmatprep.mubr.f32.mxu1 %v524_v15  ;;  %v373_v56 = vadd.f32 %v2556_v24, %v2648_v29  ;;  %v470_v11 = vmax.f32 %v375_v48, 0.0  ;;  %v2664_v12 = vpop.f32.mrb[30].mxu1  ;;  %v387_v57 = vadd.f32 %v2570_v14, %v2641_v10 }
 0x133   :  { %958 = vmatmul.mubr.f32.gmra.mrb[60].mxu0 %v523_v39  ;;  %1280 = vmatmul.mubr.f32.gmra.mrb[60].mxu1 %v523_v39  ;;  %v527_v9 = vmax.f32 %v302_v1, 0.0  ;;  %v474_v18 = vmax.f32 %v381_v59, 0.0  ;;  %v2668_v19 = vpop.f32.mrb[31].mxu1  ;;  %v379_v24 = vadd.f32 %v2562_v44, %v2648_v29  ;;  %v385_v14 = vadd.f32 %v2568_v7, %v2648_v29 }
 0x134   :  { %v528_v3 = vmax.f32 %v304_v53, 0.0  ;;  %2014 = vmatpush1.bf16.msra.mxu0 %v2013_v25  ;;  %2142 = vmatpush1.bf16.msra.mxu1 %v2141_v30  ;;  %v469_v20 = vmax.f32 %v373_v56, 0.0  ;;  %v478_v22 = vmax.f32 %v387_v57, 0.0  ;;  %v393_v25 = vadd.f32 %v2576_v36, %v2641_v10 }
 0x135   :  { %2016 = vmatprep.subr.bf16.mxu0 %v2015_v32  ;;  %2144 = vmatprep.subr.bf16.mxu1 %v2143_v58  ;;  %v473_v15 = vmax.f32 %v379_v24, 0.0  ;;  %v399_v44 = vadd.f32 %v2582_v0, %v2641_v10  ;;  %v477_v30 = vmax.f32 %v385_v14, 0.0  ;;  %v391_v32 = vadd.f32 %v2574_v28, %v2648_v29 }
 0x136   :  { %963 = vmatprep.mubr.f32.mxu0 %v528_v3  ;;  %1285 = vmatprep.mubr.f32.mxu1 %v528_v3  ;;  %v482_v27 = vmax.f32 %v393_v25, 0.0  ;;  %v405_v7 = vadd.f32 %v2588_v23, %v2641_v10  ;;  %v397_v39 = vadd.f32 %v2580_v49, %v2648_v29  ;;  %v411_v28 = vadd.f32 %v2594_v47, %v2641_v10 }
 0x137   :  { %964 = vmatmul.mubr.f32.gmra.mrb[62].mxu0 %v527_v9  ;;  %1286 = vmatmul.mubr.f32.gmra.mrb[62].mxu1 %v527_v9  ;;  %v486_v37 = vmax.f32 %v399_v44, 0.0  ;;  %v481_v36 = vmax.f32 %v391_v32, 0.0  ;;  %v403_v46 = vadd.f32 %v2586_v16, %v2648_v29  ;;  %v409_v23 = vadd.f32 %v2592_v40, %v2648_v29 }
 0x138   :  { %2018 = vmatpush1.bf16.msra.mxu0 %v2017_v55  ;;  %2146 = vmatpush1.bf16.msra.mxu1 %v2145_v31  ;;  %v490_v1 = vmax.f32 %v405_v7, 0.0  ;;  %v485_v0 = vmax.f32 %v397_v39, 0.0  ;;  %v494_v48 = vmax.f32 %v411_v28, 0.0  ;;  %v417_v49 = vadd.f32 %v2600_v17, %v2641_v10 }
 0x139   :  { %1034 = vmatprep.mubr.f32.mxu0 %v470_v11  ;;  %1356 = vmatprep.mubr.f32.mxu1 %v470_v11  ;;  %v489_v60 = vmax.f32 %v403_v46, 0.0  ;;  %v493_v58 = vmax.f32 %v409_v23, 0.0  ;;  %v415_v47 = vadd.f32 %v2598_v8, %v2648_v29  ;;  %v423_v16 = vadd.f32 %v2606_v43, %v2641_v10 }
 0x13a   :  { %v498_v61 = vmax.f32 %v417_v49, 0.0  ;;  %v421_v2 = vadd.f32 %v2604_v34, %v2648_v29  ;;  %v429_v53 = vadd.f32 %v2612_v13, %v2641_v10  ;;  %v427_v8 = vadd.f32 %v2610_v4, %v2648_v29 }
 0x13b   :  { %1035 = vmatmul.mubr.f32.vlgmr.msra.gmra.mrb[32].mxu0 %v469_v20  ;;  %1357 = vmatmul.mubr.f32.vlgmr.msra.gmra.mrb[32].mxu1 %v469_v20  ;;  %v497_v40 = vmax.f32 %v415_v47, 0.0  ;;  %v502_v17 = vmax.f32 %v423_v16, 0.0  ;;  %v435_v43 = vadd.f32 %v2618_v45, %v2641_v10  ;;  %v433_v34 = vadd.f32 %v2616_v33, %v2648_v29 }
 0x13c   :  { %1040 = vmatprep.mubr.f32.mxu0 %v474_v18  ;;  %1362 = vmatprep.mubr.f32.mxu1 %v474_v18  ;;  %v501_v3 = vmax.f32 %v421_v2, 0.0  ;;  %v506_v55 = vmax.f32 %v429_v53, 0.0  ;;  %v505_v59 = vmax.f32 %v427_v8, 0.0  ;;  %v441_v13 = vadd.f32 %v2624_v21, %v2641_v10 }
 0x13d   :  { %v510_v31 = vmax.f32 %v435_v43, 0.0  ;;  %v509_v9 = vmax.f32 %v433_v34, 0.0  ;;  %v439_v4 = vadd.f32 %v2622_v6, %v2648_v29  ;;  %v447_v45 = vadd.f32 %v2636_v63, %v2641_v10 }
 0x13e   :  { %v514_v56 = vmax.f32 %v441_v13, 0.0  ;;  %v445_v33 = vadd.f32 %v2634_v42, %v2648_v29  ;;  %v453_v21 = vadd.f32 %v2650_v38, %v2641_v10  ;;  %v451_v6 = vadd.f32 %v2644_v26, %v2648_v29 }
 0x13f   :  { %1041 = vmatmul.mubr.f32.gmra.mrb[34].mxu0 %v473_v15  ;;  %1363 = vmatmul.mubr.f32.gmra.mrb[34].mxu1 %v473_v15  ;;  %v513_v11 = vmax.f32 %v439_v4, 0.0  ;;  %v518_v18 = vmax.f32 %v447_v45, 0.0  ;;  %v459_v63 = vadd.f32 %v2660_v5, %v2641_v10  ;;  %v457_v42 = vadd.f32 %v2656_v62, %v2648_v29 }
 0x140   :  { %1046 = vmatprep.mubr.f32.mxu0 %v478_v22  ;;  %1368 = vmatprep.mubr.f32.mxu1 %v478_v22  ;;  %v517_v57 = vmax.f32 %v445_v33, 0.0  ;;  %v522_v20 = vmax.f32 %v453_v21, 0.0  ;;  %v521_v24 = vmax.f32 %v451_v6, 0.0  ;;  %v465_v38 = vadd.f32 %v2668_v19, %v2641_v10  ;;  %v787_v10 = vld [vmem:[%s2948_s4] sm:$0xf] }
 0x141   :  { %v526_v22 = vmax.f32 %v459_v63, 0.0  ;;  %v525_v25 = vmax.f32 %v457_v42, 0.0  ;;  %v463_v26 = vadd.f32 %v2664_v12, %v2648_v29  ;;  %v2310_v62 = vmov 0   ;;  %v1517_v12 = vld [vmem:[%s2949_s5] sm:$0xf] }
 0x142   :  { %v530_v15 = vmax.f32 %v465_v38, 0.0  ;;  %2280 = vset.pattern.permute.xlu1 %v2310_v62  ;;  %2281 = vset.pattern.permute.xlu0 %v2310_v62  ;;  %v2730_v19 = vrot.slane %v787_v10, %v2534_v52  ;;  %v2733_v29 = vrot.slane %v787_v10, %v2632_v41  ;;  %v2739_v14 = vrot.slane %v787_v10, %v2542_v54 }
 0x143   :  { %1047 = vmatmul.mubr.f32.gmra.mrb[36].mxu0 %v477_v30  ;;  %1369 = vmatmul.mubr.f32.gmra.mrb[36].mxu1 %v477_v30  ;;  %v529_v5 = vmax.f32 %v463_v26, 0.0  ;;  %v2742_v30 = vrot.slane %v787_v10, %v2628_v35  ;;  %v2751_v28 = vrot.slane %v1517_v12, %v2542_v54  ;;  %v2754_v23 = vrot.slane %v1517_v12, %v2632_v41 }
 0x144   :  { %1052 = vmatprep.mubr.f32.mxu0 %v482_v27  ;;  %1374 = vmatprep.mubr.f32.mxu1 %v482_v27 }
 0x147   :  { %1053 = vmatmul.mubr.f32.gmra.mrb[38].mxu0 %v481_v36  ;;  %1375 = vmatmul.mubr.f32.gmra.mrb[38].mxu1 %v481_v36 }
 0x148   :  { %1058 = vmatprep.mubr.f32.mxu0 %v486_v37  ;;  %1380 = vmatprep.mubr.f32.mxu1 %v486_v37  ;;  %v2746_v37 = vrot.slane %v1517_v12, %v2534_v52 }
 0x14b   :  { %1059 = vmatmul.mubr.f32.gmra.mrb[40].mxu0 %v485_v0  ;;  %1381 = vmatmul.mubr.f32.gmra.mrb[40].mxu1 %v485_v0 }
 0x14c   :  { %1064 = vmatprep.mubr.f32.mxu0 %v490_v1  ;;  %1386 = vmatprep.mubr.f32.mxu1 %v490_v1 }
 0x14f   :  { %1065 = vmatmul.mubr.f32.gmra.mrb[42].mxu0 %v489_v60  ;;  %1387 = vmatmul.mubr.f32.gmra.mrb[42].mxu1 %v489_v60 }
 0x150   :  { %1070 = vmatprep.mubr.f32.mxu0 %v494_v48  ;;  %1392 = vmatprep.mubr.f32.mxu1 %v494_v48 }
 0x153   :  { %1071 = vmatmul.mubr.f32.gmra.mrb[44].mxu0 %v493_v58  ;;  %1393 = vmatmul.mubr.f32.gmra.mrb[44].mxu1 %v493_v58 }
 0x154   :  { %1076 = vmatprep.mubr.f32.mxu0 %v498_v61  ;;  %1398 = vmatprep.mubr.f32.mxu1 %v498_v61 }
 0x157   :  { %1077 = vmatmul.mubr.f32.gmra.mrb[46].mxu0 %v497_v40  ;;  %1399 = vmatmul.mubr.f32.gmra.mrb[46].mxu1 %v497_v40 }
 0x158   :  { %1082 = vmatprep.mubr.f32.mxu0 %v502_v17  ;;  %1404 = vmatprep.mubr.f32.mxu1 %v502_v17 }
 0x15b   :  { %1083 = vmatmul.mubr.f32.gmra.mrb[48].mxu0 %v501_v3  ;;  %1405 = vmatmul.mubr.f32.gmra.mrb[48].mxu1 %v501_v3  ;;  %v2764_v3 = vrot.slane %v1517_v12, %v2628_v35 }
 0x15c   :  { %1088 = vmatprep.mubr.f32.mxu0 %v506_v55  ;;  %1410 = vmatprep.mubr.f32.mxu1 %v506_v55 }
 0x15f   :  { %1089 = vmatmul.mubr.f32.gmra.mrb[50].mxu0 %v505_v59  ;;  %1411 = vmatmul.mubr.f32.gmra.mrb[50].mxu1 %v505_v59 }
 0x160   :  { %1094 = vmatprep.mubr.f32.mxu0 %v510_v31  ;;  %1416 = vmatprep.mubr.f32.mxu1 %v510_v31 }
 0x163   :  { %1095 = vmatmul.mubr.f32.gmra.mrb[52].mxu0 %v509_v9  ;;  %1417 = vmatmul.mubr.f32.gmra.mrb[52].mxu1 %v509_v9 }
 0x164   :  { %1100 = vmatprep.mubr.f32.mxu0 %v514_v56  ;;  %1422 = vmatprep.mubr.f32.mxu1 %v514_v56 }
 0x167   :  { %1101 = vmatmul.mubr.f32.gmra.mrb[54].mxu0 %v513_v11  ;;  %1423 = vmatmul.mubr.f32.gmra.mrb[54].mxu1 %v513_v11 }
 0x168   :  { %1106 = vmatprep.mubr.f32.mxu0 %v518_v18  ;;  %1428 = vmatprep.mubr.f32.mxu1 %v518_v18 }
 0x16b   :  { %1107 = vmatmul.mubr.f32.gmra.mrb[56].mxu0 %v517_v57  ;;  %1429 = vmatmul.mubr.f32.gmra.mrb[56].mxu1 %v517_v57 }
 0x16c   :  { %1112 = vmatprep.mubr.f32.mxu0 %v522_v20  ;;  %1434 = vmatprep.mubr.f32.mxu1 %v522_v20 }
 0x16f   :  { %1113 = vmatmul.mubr.f32.gmra.mrb[58].mxu0 %v521_v24  ;;  %1435 = vmatmul.mubr.f32.gmra.mrb[58].mxu1 %v521_v24 }
 0x170   :  { %1118 = vmatprep.mubr.f32.mxu0 %v526_v22  ;;  %1440 = vmatprep.mubr.f32.mxu1 %v526_v22 }
 0x173   :  { %1119 = vmatmul.mubr.f32.gmra.mrb[60].mxu0 %v525_v25  ;;  %1441 = vmatmul.mubr.f32.gmra.mrb[60].mxu1 %v525_v25 }
 0x174   :  { %1124 = vmatprep.mubr.f32.mxu0 %v530_v15  ;;  %1446 = vmatprep.mubr.f32.mxu1 %v530_v15 }
 0x177   :  { %1125 = vmatmul.mubr.f32.gmra.mrb[62].mxu0 %v529_v5  ;;  %1447 = vmatmul.mubr.f32.gmra.mrb[62].mxu1 %v529_v5 }
 0x20e   :  { %v1036_v27 = vpop.f32.mrb[32].mxu0  ;;  %v1358_v44 = vpop.f32.mrb[32].mxu1 }
 0x20f   :  { %v2147_v32 = vadd.f32 %v1036_v27, %v2730_v19  ;;  %v2179_v7 = vadd.f32 %v1358_v44, %v2733_v29  ;;  %v1038_v36 = vpop.f32.mrb[33].mxu0  ;;  %v1360_v39 = vpop.f32.mrb[33].mxu1 }
 0x210   :  { %v2148_v1 = vadd.f32 %v1038_v36, %v2739_v14  ;;  %v2180_v49 = vadd.f32 %v1360_v39, %v2742_v30 }
 0x211   :  { %v1453_v0 = vmax.f32 %v2147_v32, 0.0  ;;  %v1455_v46 = vmax.f32 %v2179_v7, 0.0 }
 0x212   :  { %v1454_v48 = vmax.f32 %v2148_v1, 0.0  ;;  %v1042_v60 = vpop.f32.mrb[34].mxu0  ;;  %v1364_v58 = vpop.f32.mrb[34].mxu1  ;;  %v1456_v55 = vmax.f32 %v2180_v49, 0.0 }
 0x213   :  { %v1539_v47 = vmul.f32 %v2746_v37, %v1453_v0  ;;  %v2149_v61 = vadd.f32 %v1042_v60, %v2730_v19  ;;  %v2181_v16 = vadd.f32 %v1364_v58, %v2733_v29  ;;  %v1044_v40 = vpop.f32.mrb[35].mxu0  ;;  %v1366_v2 = vpop.f32.mrb[35].mxu1  ;;  %v1541_v8 = vmul.f32 %v2754_v23, %v1455_v46 }
 0x214   :  { %v1540_v54 = vmul.f32 %v2751_v28, %v1454_v48  ;;  %v2150_v17 = vadd.f32 %v1044_v40, %v2739_v14  ;;  %v2182_v41 = vadd.f32 %v1366_v2, %v2742_v30  ;;  %v1542_v38 = vmul.f32 %v2764_v3, %v1456_v55 }
 0x215   :  { %v1457_v53 = vmax.f32 %v2149_v61, 0.0  ;;  %v1459_v9 = vmax.f32 %v2181_v16, 0.0 }
 0x216   :  { %v1458_v43 = vmax.f32 %v2150_v17, 0.0  ;;  %v1048_v59 = vpop.f32.mrb[36].mxu0  ;;  %v1370_v34 = vpop.f32.mrb[36].mxu1  ;;  %v1603_v31 = vadd.f32 %v1540_v54, %v1539_v47  ;;  %v1460_v18 = vmax.f32 %v2182_v41, 0.0 }
 0x217   :  { %v1543_v13 = vmul.f32 %v2746_v37, %v1457_v53  ;;  %v2151_v4 = vadd.f32 %v1048_v59, %v2730_v19  ;;  %v2183_v56 = vadd.f32 %v1370_v34, %v2733_v29  ;;  %v1050_v45 = vpop.f32.mrb[37].mxu0  ;;  %v1372_v11 = vpop.f32.mrb[37].mxu1  ;;  %v1545_v25 = vmul.f32 %v2754_v23, %v1459_v9 }
 0x218   :  { %v1544_v33 = vmul.f32 %v2751_v28, %v1458_v43  ;;  %v2152_v35 = vadd.f32 %v1050_v45, %v2739_v14  ;;  %v2184_v57 = vadd.f32 %v1372_v11, %v2742_v30  ;;  %v1604_v6 = vadd.f32 %v1603_v31, %v1541_v8 }
 0x219   :  { %v1461_v21 = vmax.f32 %v2151_v4, 0.0  ;;  %v1463_v63 = vmax.f32 %v2183_v56, 0.0  ;;  %v1546_v32 = vmul.f32 %v2764_v3, %v1460_v18 }
 0x21a   :  { %v1608_v20 = vadd.f32 %v1544_v33, %v1543_v13  ;;  %v1462_v24 = vmax.f32 %v2152_v35, 0.0  ;;  %v1054_v42 = vpop.f32.mrb[38].mxu0  ;;  %v1376_v22 = vpop.f32.mrb[38].mxu1  ;;  %v1605_v44 = vadd.f32 %v1604_v6, %v1542_v38  ;;  %v1464_v7 = vmax.f32 %v2184_v57, 0.0 }
 0x21b   :  { %v1547_v26 = vmul.f32 %v2746_v37, %v1461_v21  ;;  %v2153_v15 = vadd.f32 %v1054_v42, %v2730_v19  ;;  %v2185_v5 = vadd.f32 %v1376_v22, %v2733_v29  ;;  %v1056_v62 = vpop.f32.mrb[39].mxu0  ;;  %v1378_v10 = vpop.f32.mrb[39].mxu1  ;;  %v1549_v1 = vmul.f32 %v2754_v23, %v1463_v63 }
 0x21c   :  { %v1548_v12 = vmul.f32 %v2751_v28, %v1462_v24  ;;  %v2154_v27 = vadd.f32 %v1056_v62, %v2739_v14  ;;  %v1609_v39 = vadd.f32 %v1608_v20, %v1545_v25  ;;  %v2186_v46 = vadd.f32 %v1378_v10, %v2742_v30  ;;  %1606 = vadd.xlane.f32.xlu0 %v1605_v44 }
 0x21d   :  { %v1465_v36 = vmax.f32 %v2153_v15, 0.0  ;;  %v1467_v47 = vmax.f32 %v2185_v5, 0.0  ;;  %v1550_v55 = vmul.f32 %v2764_v3, %v1464_v7 }
 0x21e   :  { %v1466_v0 = vmax.f32 %v2154_v27, 0.0  ;;  %v1060_v48 = vpop.f32.mrb[40].mxu0  ;;  %v1382_v49 = vpop.f32.mrb[40].mxu1  ;;  %v1613_v60 = vadd.f32 %v1548_v12, %v1547_v26  ;;  %v1610_v8 = vadd.f32 %v1609_v39, %v1546_v32  ;;  %v1468_v34 = vmax.f32 %v2186_v46, 0.0 }
 0x21f   :  { %v1551_v58 = vmul.f32 %v2746_v37, %v1465_v36  ;;  %v2155_v61 = vadd.f32 %v1060_v48, %v2730_v19  ;;  %v2187_v16 = vadd.f32 %v1382_v49, %v2733_v29  ;;  %v1062_v40 = vpop.f32.mrb[41].mxu0  ;;  %v1384_v2 = vpop.f32.mrb[41].mxu1  ;;  %v1553_v56 = vmul.f32 %v2754_v23, %v1467_v47 }
 0x220   :  { %v1552_v54 = vmul.f32 %v2751_v28, %v1466_v0  ;;  %v2156_v17 = vadd.f32 %v1062_v40, %v2739_v14  ;;  %v2188_v53 = vadd.f32 %v1384_v2, %v2742_v30  ;;  %v1614_v43 = vadd.f32 %v1613_v60, %v1549_v1  ;;  %1611 = vadd.xlane.f32.xlu0 %v1610_v8 }
 0x221   :  { %v1469_v41 = vmax.f32 %v2155_v61, 0.0  ;;  %v1471_v31 = vmax.f32 %v2187_v16, 0.0  ;;  %v1554_v22 = vmul.f32 %v2764_v3, %v1468_v34 }
 0x222   :  { %v1618_v59 = vadd.f32 %v1552_v54, %v1551_v58  ;;  %v1470_v13 = vmax.f32 %v2156_v17, 0.0  ;;  %v1066_v9 = vpop.f32.mrb[42].mxu0  ;;  %v1388_v4 = vpop.f32.mrb[42].mxu1  ;;  %v1472_v57 = vmax.f32 %v2188_v53, 0.0  ;;  %v1615_v24 = vadd.f32 %v1614_v43, %v1550_v55 }
 0x223   :  { %v1555_v45 = vmul.f32 %v2746_v37, %v1469_v41  ;;  %v2157_v11 = vadd.f32 %v1066_v9, %v2730_v19  ;;  %v2189_v33 = vadd.f32 %v1388_v4, %v2733_v29  ;;  %v1068_v35 = vpop.f32.mrb[43].mxu0  ;;  %v1390_v18 = vpop.f32.mrb[43].mxu1  ;;  %v1557_v38 = vmul.f32 %v2754_v23, %v1471_v31 }
 0x224   :  { %v1556_v21 = vmul.f32 %v2751_v28, %v1470_v13  ;;  %v2158_v6 = vadd.f32 %v1068_v35, %v2739_v14  ;;  %v2190_v63 = vadd.f32 %v1390_v18, %v2742_v30  ;;  %v1619_v42 = vadd.f32 %v1618_v59, %v1553_v56  ;;  %1616 = vadd.xlane.f32.xlu1 %v1615_v24 }
 0x225   :  { %v1473_v20 = vmax.f32 %v2157_v11, 0.0  ;;  %v1475_v10 = vmax.f32 %v2189_v33, 0.0  ;;  %v1558_v7 = vmul.f32 %v2764_v3, %v1472_v57 }
 0x226   :  { %v1623_v25 = vadd.f32 %v1556_v21, %v1555_v45  ;;  %v1474_v26 = vmax.f32 %v2158_v6, 0.0  ;;  %v1072_v15 = vpop.f32.mrb[44].mxu0  ;;  %v1394_v5 = vpop.f32.mrb[44].mxu1  ;;  %v1476_v1 = vmax.f32 %v2190_v63, 0.0  ;;  %v1620_v46 = vadd.f32 %v1619_v42, %v1554_v22 }
 0x227   :  { %v1559_v62 = vmul.f32 %v2746_v37, %v1473_v20  ;;  %v2159_v12 = vadd.f32 %v1072_v15, %v2730_v19  ;;  %v2191_v27 = vadd.f32 %v1394_v5, %v2733_v29  ;;  %v1074_v44 = vpop.f32.mrb[45].mxu0  ;;  %v1396_v32 = vpop.f32.mrb[45].mxu1  ;;  %v1561_v40 = vmul.f32 %v2754_v23, %v1475_v10 }
 0x228   :  { %v1560_v36 = vmul.f32 %v2751_v28, %v1474_v26  ;;  %v2160_v39 = vadd.f32 %v1074_v44, %v2739_v14  ;;  %v1624_v48 = vadd.f32 %v1623_v25, %v1557_v38  ;;  %v2192_v47 = vadd.f32 %v1396_v32, %v2742_v30  ;;  %1621 = vadd.xlane.f32.xlu1 %v1620_v46 }
 0x229   :  { %v1477_v0 = vmax.f32 %v2159_v12, 0.0  ;;  %v1479_v60 = vmax.f32 %v2191_v27, 0.0  ;;  %v1562_v59 = vmul.f32 %v2764_v3, %v1476_v1 }
 0x22a   :  { %v1628_v49 = vadd.f32 %v1560_v36, %v1559_v62  ;;  %v1478_v58 = vmax.f32 %v2160_v39, 0.0  ;;  %v1078_v61 = vpop.f32.mrb[46].mxu0  ;;  %v1400_v16 = vpop.f32.mrb[46].mxu1  ;;  %v1625_v31 = vadd.f32 %v1624_v48, %v1558_v7  ;;  %v1480_v56 = vmax.f32 %v2192_v47, 0.0 }
 0x22b   :  { %v1563_v2 = vmul.f32 %v2746_v37, %v1477_v0  ;;  %v2161_v54 = vadd.f32 %v1078_v61, %v2730_v19  ;;  %v2193_v17 = vadd.f32 %v1400_v16, %v2733_v29  ;;  %v1080_v53 = vpop.f32.mrb[47].mxu0  ;;  %v1402_v41 = vpop.f32.mrb[47].mxu1  ;;  %v1565_v9 = vmul.f32 %v2754_v23, %v1479_v60 }
 0x22c   :  { %v1564_v8 = vmul.f32 %v2751_v28, %v1478_v58  ;;  %v2162_v55 = vadd.f32 %v1080_v53, %v2739_v14  ;;  %v2194_v43 = vadd.f32 %v1402_v41, %v2742_v30  ;;  %v1629_v13 = vadd.f32 %v1628_v49, %v1561_v40  ;;  %1626 = vadd.xlane.f32.xlu0 %v1625_v31 }
 0x22d   :  { %v1481_v34 = vmax.f32 %v2161_v54, 0.0  ;;  %v1483_v18 = vmax.f32 %v2193_v17, 0.0  ;;  %v1566_v15 = vmul.f32 %v2764_v3, %v1480_v56 }
 0x22e   :  { %v1633_v4 = vadd.f32 %v1564_v8, %v1563_v2  ;;  %v1482_v45 = vmax.f32 %v2162_v55, 0.0  ;;  %v1084_v11 = vpop.f32.mrb[48].mxu0  ;;  %v1406_v33 = vpop.f32.mrb[48].mxu1  ;;  %v1484_v24 = vmax.f32 %v2194_v43, 0.0  ;;  %v1630_v25 = vadd.f32 %v1629_v13, %v1562_v59 }
 0x22f   :  { %v1567_v35 = vmul.f32 %v2746_v37, %v1481_v34  ;;  %v2163_v21 = vadd.f32 %v1084_v11, %v2730_v19  ;;  %v2195_v57 = vadd.f32 %v1406_v33, %v2733_v29  ;;  %v1086_v6 = vpop.f32.mrb[49].mxu0  ;;  %v1408_v20 = vpop.f32.mrb[49].mxu1  ;;  %v1569_v44 = vmul.f32 %v2754_v23, %v1483_v18 }
 0x230   :  { %v1568_v63 = vmul.f32 %v2751_v28, %v1482_v45  ;;  %v2164_v42 = vadd.f32 %v1086_v6, %v2739_v14  ;;  %v2196_v38 = vadd.f32 %v1408_v20, %v2742_v30  ;;  %v1634_v26 = vadd.f32 %v1633_v4, %v1565_v9  ;;  %1631 = vadd.xlane.f32.xlu1 %v1630_v25 }
 0x231   :  { %v1485_v22 = vmax.f32 %v2163_v21, 0.0  ;;  %v1487_v62 = vmax.f32 %v2195_v57, 0.0  ;;  %v1570_v0 = vmul.f32 %v2764_v3, %v1484_v24 }
 0x232   :  { %v1638_v5 = vadd.f32 %v1568_v63, %v1567_v35  ;;  %v1486_v10 = vmax.f32 %v2164_v42, 0.0  ;;  %v1090_v12 = vpop.f32.mrb[50].mxu0  ;;  %v1412_v27 = vpop.f32.mrb[50].mxu1  ;;  %v1488_v60 = vmax.f32 %v2196_v38, 0.0  ;;  %v1635_v47 = vadd.f32 %v1634_v26, %v1566_v15 }
 0x233   :  { %v1571_v32 = vmul.f32 %v2746_v37, %v1485_v22  ;;  %v2165_v7 = vadd.f32 %v1090_v12, %v2730_v19  ;;  %v2197_v36 = vadd.f32 %v1412_v27, %v2733_v29  ;;  %v1092_v39 = vpop.f32.mrb[51].mxu0  ;;  %v1414_v1 = vpop.f32.mrb[51].mxu1  ;;  %v1573_v16 = vmul.f32 %v2754_v23, %v1487_v62 }
 0x234   :  { %v1572_v46 = vmul.f32 %v2751_v28, %v1486_v10  ;;  %v2166_v48 = vadd.f32 %v1092_v39, %v2739_v14  ;;  %v2198_v49 = vadd.f32 %v1414_v1, %v2742_v30  ;;  %v1639_v61 = vadd.f32 %v1638_v5, %v1569_v44  ;;  %1636 = vadd.xlane.f32.xlu0 %v1635_v47 }
 0x235   :  { %v1489_v58 = vmax.f32 %v2165_v7, 0.0  ;;  %v1491_v2 = vmax.f32 %v2197_v36, 0.0  ;;  %v1574_v4 = vmul.f32 %v2764_v3, %v1488_v60 }
 0x236   :  { %v1643_v40 = vadd.f32 %v1572_v46, %v1571_v32  ;;  %v1490_v54 = vmax.f32 %v2166_v48, 0.0  ;;  %v1096_v17 = vpop.f32.mrb[52].mxu0  ;;  %v1418_v53 = vpop.f32.mrb[52].mxu1  ;;  %v1492_v8 = vmax.f32 %v2198_v49, 0.0  ;;  %v1640_v45 = vadd.f32 %v1639_v61, %v1570_v0 }
 0x237   :  { %v1575_v41 = vmul.f32 %v2746_v37, %v1489_v58  ;;  %v2167_v55 = vadd.f32 %v1096_v17, %v2730_v19  ;;  %v2199_v43 = vadd.f32 %v1418_v53, %v2733_v29  ;;  %v1098_v59 = vpop.f32.mrb[53].mxu0  ;;  %v1420_v34 = vpop.f32.mrb[53].mxu1  ;;  %v1577_v33 = vmul.f32 %v2754_v23, %v1491_v2 }
 0x238   :  { %v1576_v31 = vmul.f32 %v2751_v28, %v1490_v54  ;;  %v2168_v13 = vadd.f32 %v1098_v59, %v2739_v14  ;;  %v2200_v9 = vadd.f32 %v1420_v34, %v2742_v30  ;;  %v1644_v11 = vadd.f32 %v1643_v40, %v1573_v16  ;;  %1641 = vadd.xlane.f32.xlu0 %v1640_v45  ;;  %v1683_v54 = vld [vmem:[#allocation2] sm:$0x1] }
 0x239   :  { %v1493_v56 = vmax.f32 %v2167_v55, 0.0  ;;  %v1495_v18 = vmax.f32 %v2199_v43, 0.0  ;;  %v1578_v20 = vmul.f32 %v2764_v3, %v1492_v8 }
 0x23a   :  { %v1648_v35 = vadd.f32 %v1576_v31, %v1575_v41  ;;  %v1494_v21 = vmax.f32 %v2168_v13, 0.0  ;;  %v1102_v57 = vpop.f32.mrb[54].mxu0  ;;  %v1424_v6 = vpop.f32.mrb[54].mxu1  ;;  %v1496_v26 = vmax.f32 %v2200_v9, 0.0  ;;  %v1645_v12 = vadd.f32 %v1644_v11, %v1574_v4 }
 0x23b   :  { %v1579_v63 = vmul.f32 %v2746_v37, %v1493_v56  ;;  %v2169_v24 = vadd.f32 %v1102_v57, %v2730_v19  ;;  %v2201_v42 = vadd.f32 %v1424_v6, %v2733_v29  ;;  %v1104_v22 = vpop.f32.mrb[55].mxu0  ;;  %v1426_v38 = vpop.f32.mrb[55].mxu1  ;;  %v1581_v44 = vmul.f32 %v2754_v23, %v1495_v18 }
 0x23c   :  { %v1580_v25 = vmul.f32 %v2751_v28, %v1494_v21  ;;  %v2170_v15 = vadd.f32 %v1104_v22, %v2739_v14  ;;  %v2202_v5 = vadd.f32 %v1426_v38, %v2742_v30  ;;  %v1649_v27 = vadd.f32 %v1648_v35, %v1577_v33  ;;  %1646 = vadd.xlane.f32.xlu0 %v1645_v12 }
 0x23d   :  { %v1497_v62 = vmax.f32 %v2169_v24, 0.0  ;;  %v1499_v10 = vmax.f32 %v2201_v42, 0.0  ;;  %v1582_v34 = vmul.f32 %v2764_v3, %v1496_v26 }
 0x23e   :  { %v1653_v32 = vadd.f32 %v1580_v25, %v1579_v63  ;;  %v1498_v7 = vmax.f32 %v2170_v15, 0.0  ;;  %v1500_v36 = vmax.f32 %v2202_v5, 0.0  ;;  %v1108_v39 = vpop.f32.mrb[56].mxu0  ;;  %v1430_v1 = vpop.f32.mrb[56].mxu1  ;;  %v1650_v2 = vadd.f32 %v1649_v27, %v1578_v20 }
 0x23f   :  { %v1583_v0 = vmul.f32 %v2746_v37, %v1497_v62  ;;  %v1585_v46 = vmul.f32 %v2754_v23, %v1499_v10  ;;  %v2171_v48 = vadd.f32 %v1108_v39, %v2730_v19  ;;  %v2203_v49 = vadd.f32 %v1430_v1, %v2733_v29  ;;  %v1110_v60 = vpop.f32.mrb[57].mxu0  ;;  %v1432_v58 = vpop.f32.mrb[57].mxu1 }
 0x240   :  { %v1584_v47 = vmul.f32 %v2751_v28, %v1498_v7  ;;  %v1586_v61 = vmul.f32 %v2764_v3, %v1500_v36  ;;  %v2172_v16 = vadd.f32 %v1110_v60, %v2739_v14  ;;  %v1654_v17 = vadd.f32 %v1653_v32, %v1581_v44  ;;  %1651 = vadd.xlane.f32.xlu0 %v1650_v2 }
 0x241   :  { %v1501_v40 = vmax.f32 %v2171_v48, 0.0  ;;  %v1503_v41 = vmax.f32 %v2203_v49, 0.0  ;;  %v2204_v55 = vadd.f32 %v1432_v58, %v2742_v30  ;;  %1686 = vperm.xlu1 %2280, %v1683_v54  }
 0x242   :  { %v1658_v53 = vadd.f32 %v1584_v47, %v1583_v0  ;;  %v1502_v8 = vmax.f32 %v2172_v16, 0.0  ;;  %v1114_v43 = vpop.f32.mrb[58].mxu0  ;;  %v1436_v59 = vpop.f32.mrb[58].mxu1  ;;  %v1655_v18 = vadd.f32 %v1654_v17, %v1582_v34 }
 0x243   :  { %v1587_v31 = vmul.f32 %v2746_v37, %v1501_v40  ;;  %v2173_v13 = vadd.f32 %v1114_v43, %v2730_v19  ;;  %v2205_v9 = vadd.f32 %v1436_v59, %v2733_v29  ;;  %v1116_v4 = vpop.f32.mrb[59].mxu0  ;;  %v1438_v56 = vpop.f32.mrb[59].mxu1  ;;  %v1589_v57 = vmul.f32 %v2754_v23, %v1503_v41 }
 0x244   :  { %v1588_v45 = vmul.f32 %v2751_v28, %v1502_v8  ;;  %v2174_v11 = vadd.f32 %v1116_v4, %v2739_v14  ;;  %v2206_v35 = vadd.f32 %v1438_v56, %v2742_v30  ;;  %v1659_v21 = vadd.f32 %v1658_v53, %v1585_v46  ;;  %1656 = vadd.xlane.f32.xlu0 %v1655_v18 }
 0x245   :  { %v1505_v33 = vmax.f32 %v2173_v13, 0.0  ;;  %v1504_v20 = vmax.f32 %v2204_v55, 0.0  ;;  %v1507_v38 = vmax.f32 %v2205_v9, 0.0 }
 0x246   :  { %v1663_v6 = vadd.f32 %v1588_v45, %v1587_v31  ;;  %v1506_v63 = vmax.f32 %v2174_v11, 0.0  ;;  %v1120_v24 = vpop.f32.mrb[60].mxu0  ;;  %v1442_v42 = vpop.f32.mrb[60].mxu1  ;;  %v1508_v27 = vmax.f32 %v2206_v35, 0.0  ;;  %v1660_v7 = vadd.f32 %v1659_v21, %v1586_v61 }
 0x247   :  { %v1591_v22 = vmul.f32 %v2746_v37, %v1505_v33  ;;  %v2175_v25 = vadd.f32 %v1120_v24, %v2730_v19  ;;  %v2207_v26 = vadd.f32 %v1442_v42, %v2733_v29  ;;  %v1122_v15 = vpop.f32.mrb[61].mxu0  ;;  %v1444_v5 = vpop.f32.mrb[61].mxu1  ;;  %v1590_v36 = vmul.f32 %v2764_v3, %v1504_v20 }
 0x248   :  { %v1592_v62 = vmul.f32 %v2751_v28, %v1506_v63  ;;  %v2176_v10 = vadd.f32 %v1122_v15, %v2739_v14  ;;  %v2208_v12 = vadd.f32 %v1444_v5, %v2742_v30  ;;  %v1664_v32 = vadd.f32 %v1663_v6, %v1589_v57 }
 0x249   :  { %v1509_v44 = vmax.f32 %v2175_v25, 0.0  ;;  %v1511_v1 = vmax.f32 %v2207_v26, 0.0  ;;  %v1593_v49 = vmul.f32 %v2754_v23, %v1507_v38  ;;  %v1594_v53 = vmul.f32 %v2764_v3, %v1508_v27 }
 0x24a   :  { %v1668_v39 = vadd.f32 %v1592_v62, %v1591_v22  ;;  %v1510_v0 = vmax.f32 %v2176_v10, 0.0  ;;  %v1126_v46 = vpop.f32.mrb[62].mxu0  ;;  %v1448_v48 = vpop.f32.mrb[62].mxu1  ;;  %v1512_v61 = vmax.f32 %v2208_v12, 0.0  ;;  %v1665_v8 = vadd.f32 %v1664_v32, %v1590_v36 }
 0x24b   :  { %v1595_v60 = vmul.f32 %v2746_v37, %v1509_v44  ;;  %v2177_v58 = vadd.f32 %v1126_v46, %v2730_v19  ;;  %v2209_v47 = vadd.f32 %v1448_v48, %v2733_v29  ;;  %v1128_v16 = vpop.f32.mrb[63].mxu0  ;;  %v1450_v40 = vpop.f32.mrb[63].mxu1  ;;  %v1597_v43 = vmul.f32 %v2754_v23, %v1511_v1 }
 0x24c   :  { %v1596_v2 = vmul.f32 %v2751_v28, %v1510_v0  ;;  %v2178_v54 = vadd.f32 %v1128_v16, %v2739_v14  ;;  %v2210_v17 = vadd.f32 %v1450_v40, %v2742_v30  ;;  %v1669_v55 = vadd.f32 %v1668_v39, %v1593_v49  ;;  %1666 = vadd.xlane.f32.xlu0 %v1665_v8 }
 0x24d   :  { %v1513_v41 = vmax.f32 %v2177_v58, 0.0  ;;  %v1515_v19 = vmax.f32 %v2209_v47, 0.0  ;;  %v1598_v13 = vmul.f32 %v2764_v3, %v1512_v61 }
 0x24e   :  { %v1673_v59 = vadd.f32 %v1596_v2, %v1595_v60  ;;  %v1514_v34 = vmax.f32 %v2178_v54, 0.0  ;;  %v1670_v31 = vadd.f32 %v1669_v55, %v1594_v53  ;;  %v1516_v9 = vmax.f32 %v2210_v17, 0.0 }
 0x24f   :  { %v1599_v29 = vmul.f32 %v2746_v37, %v1513_v41  ;;  %v1601_v4 = vmul.f32 %v2754_v23, %v1515_v19  ;;  %v2885_v23 = vand.u32 127, %v76_v50 }
 0x250   :  { %v1600_v14 = vmul.f32 %v2751_v28, %v1514_v34  ;;  %v1674_v30 = vadd.f32 %v1673_v59, %v1597_v43  ;;  %1671 = vadd.xlane.f32.xlu0 %v1670_v31  ;;  %v1602_v11 = vmul.f32 %v2764_v3, %v1516_v9 }
 0x251   :  { %v1731_v22 = vadd.s32 4294967288, %v2885_v23  ;;  %v1738_v38 = vadd.s32 4294967280, %v2885_v23  ;;  %v1729_v5 = vsub.s32 %v2885_v23, %v2531_v51  ;;  %v1745_v27 = vadd.s32 4294967272, %v2885_v23 }
 0x252   :  { %v1678_v56 = vadd.f32 %v1600_v14, %v1599_v29  ;;  %v1675_v45 = vadd.f32 %v1674_v30, %v1598_v13  ;;  %v1759_v46 = vadd.s32 4294967256, %v2885_v23  ;;  %v1766_v47 = vadd.s32 4294967248, %v2885_v23 }
 0x253   :  { %v1734_v50 = vsub.s32 %v1731_v22, %v2531_v51  ;;  %v1741_v10 = vsub.s32 %v1738_v38, %v2531_v51  ;;  %v1748_v1 = vsub.s32 %v1745_v27, %v2531_v51  ;;  %v1773_v17 = vadd.s32 4294967240, %v2885_v23 }
 0x254   :  { %v1679_v33 = vadd.f32 %v1678_v56, %v1601_v4  ;;  %1676 = vadd.xlane.f32.xlu0 %v1675_v45  ;;  %v1762_v2 = vsub.s32 %v1759_v46, %v2531_v51  ;;  %v1769_v41 = vsub.s32 %v1766_v47, %v2531_v51  ;;  %v1780_v55 = vadd.s32 4294967232, %v2885_v23 }
 0x255   :  { %v1787_v59 = vadd.s32 4294967224, %v2885_v23  ;;  %v1794_v19 = vadd.s32 4294967216, %v2885_v23  ;;  %v1776_v29 = vsub.s32 %v1773_v17, %v2531_v51  ;;  %v1801_v45 = vadd.s32 4294967208, %v2885_v23 }
 0x256   :  { %v1680_v35 = vadd.f32 %v1679_v33, %v1602_v11  ;;  %v1783_v14 = vsub.s32 %v1780_v55, %v2531_v51 }
 0x257   :  { %v1790_v4 = vsub.s32 %v1787_v59, %v2531_v51  ;;  %v1797_v33 = vsub.s32 %v1794_v19, %v2531_v51 }
 0x258   :  { %1681 = vadd.xlane.f32.xlu0 %v1680_v35 }
 0x265   :  { %1661 = vadd.xlane.f32.xlu1 %v1660_v7  ;;  %v1752_v7 = vadd.s32 4294967264, %v2885_v23 }
 0x267   :  { %v1755_v60 = vsub.s32 %v1752_v7, %v2531_v51 }
 0x2a9   :  { %v1607_v37 = vpop.xlane.xlu0 %1606 }
 0x2ad   :  { %v1612_v18 = vpop.xlane.xlu0 %1611 }
 0x2b1   :  { %v1617_v21 = vpop.xlane.xlu1 %1616 }
 0x2b5   :  { %v1622_v28 = vpop.xlane.xlu1 %1621 }
 0x2b9   :  { %v1627_v57 = vpop.xlane.xlu0 %1626 }
 0x2bd   :  { %v1632_v20 = vpop.xlane.xlu1 %1631 }
 0x2c1   :  { %v1637_v6 = vpop.xlane.xlu0 %1636  ;;  %v1687_v24 = vpop.permute.xlu1 %1686 }
 0x2c2   :  { %v2888_v3 = vrot.slane %v1687_v24, %v2534_v52  ;;  %v1804_v24 = vsub.s32 %v1801_v45, %v2531_v51 }
 0x2c4   :  { %v1693_v26 = vadd.f32 %v2888_v3, %v1607_v37  ;;  %v1694_v15 = vadd.f32 %v2888_v3, %v1612_v18  ;;  %v1695_v62 = vadd.f32 %v2888_v3, %v1617_v21  ;;  %v1696_v36 = vadd.f32 %v2888_v3, %v1622_v28 }
 0x2c5   :  { %v1642_v63 = vpop.xlane.xlu0 %1641  ;;  %v1697_v48 = vadd.f32 %v2888_v3, %v1627_v57  ;;  %v1698_v16 = vadd.f32 %v2888_v3, %v1632_v20  ;;  %v1699_v8 = vadd.f32 %v2888_v3, %v1637_v6  ;;  %v1808_v37 = vadd.s32 4294967200, %v2885_v23 }
 0x2c6   :  { %v1730_v52 = vrot.slane %v1693_v26, %v1729_v5  ;;  %v1735_v12 = vrot.slane %v1694_v15, %v1734_v50  ;;  %v1742_v32 = vrot.slane %v1695_v62, %v1741_v10  ;;  %v1749_v58 = vrot.slane %v1696_v36, %v1748_v1 }
 0x2c7   :  { %v1756_v61 = vrot.slane %v1697_v48, %v1755_v60  ;;  %v1763_v43 = vrot.slane %v1698_v16, %v1762_v2  ;;  %v1700_v31 = vadd.f32 %v2888_v3, %v1642_v63  ;;  %v1770_v13 = vrot.slane %v1699_v8, %v1769_v41 }
 0x2c8   :  { %v1737_v39 = vsel %vm1736_vm1, %v1735_v12, %v1730_v52  ;;  %v1815_v21 = vadd.s32 4294967192, %v2885_v23  ;;  %v1822_v57 = vadd.s32 4294967184, %v2885_v23  ;;  %v1829_v28 = vadd.s32 4294967176, %v2885_v23 }
 0x2c9   :  { %v1647_v42 = vpop.xlane.xlu0 %1646  ;;  %v1744_v49 = vsel %vm1743_vm2, %v1742_v32, %v1737_v39  ;;  %v1777_v18 = vrot.slane %v1700_v31, %v1776_v29  ;;  %v1811_v22 = vsub.s32 %v1808_v37, %v2531_v51 }
 0x2ca   :  { %v1751_v40 = vsel %vm1750_vm3, %v1749_v58, %v1744_v49  ;;  %v1701_v9 = vadd.f32 %v2888_v3, %v1647_v42  ;;  %v1818_v15 = vsub.s32 %v1815_v21, %v2531_v51  ;;  %v1825_v50 = vsub.s32 %v1822_v57, %v2531_v51 }
 0x2cb   :  { %v1758_v53 = vsel %vm1757_vm4, %v1756_v61, %v1751_v40  ;;  %v1832_v52 = vsub.s32 %v1829_v28, %v2531_v51 }
 0x2cc   :  { %v1765_v34 = vsel %vm1764_vm5, %v1763_v43, %v1758_v53  ;;  %v1784_v6 = vrot.slane %v1701_v9, %v1783_v14 }
 0x2cd   :  { %v1652_v25 = vpop.xlane.xlu0 %1651  ;;  %v1772_v11 = vsel %vm1771_vm6, %v1770_v13, %v1765_v34 }
 0x2ce   :  { %v1702_v56 = vadd.f32 %v2888_v3, %v1652_v25  ;;  %v1779_v20 = vsel %vm1778_vm7, %v1777_v18, %v1772_v11 }
 0x2cf   :  { %v1786_v62 = vsel %vm1785_vm8, %v1784_v6, %v1779_v20 }
 0x2d0   :  { %v1791_v63 = vrot.slane %v1702_v56, %v1790_v4 }
 0x2d1   :  { %v1657_v44 = vpop.xlane.xlu0 %1656 }
 0x2d2   :  { %v1703_v35 = vadd.f32 %v2888_v3, %v1657_v44  ;;  %v1793_v12 = vsel %vm1792_vm9, %v1791_v63, %v1786_v62 }
 0x2d4   :  { %v1798_v42 = vrot.slane %v1703_v35, %v1797_v33 }
 0x2d6   :  { %v1800_v32 = vsel %vm1799_vm10, %v1798_v42, %v1793_v12 }
 0x2d9   :  { %v1667_v0 = vpop.xlane.xlu0 %1666 }
 0x2da   :  { %v1705_v38 = vadd.f32 %v2888_v3, %v1667_v0 }
 0x2dc   :  { %v1812_v7 = vrot.slane %v1705_v38, %v1811_v22 }
 0x2dd   :  { %v1672_v54 = vpop.xlane.xlu0 %1671 }
 0x2de   :  { %v1706_v5 = vadd.f32 %v2888_v3, %v1672_v54 }
 0x2e0   :  { %v1819_v36 = vrot.slane %v1706_v5, %v1818_v15 }
 0x2e1   :  { %v1677_v30 = vpop.xlane.xlu0 %1676 }
 0x2e2   :  { %v1707_v10 = vadd.f32 %v2888_v3, %v1677_v30 }
 0x2e4   :  { %v1826_v1 = vrot.slane %v1707_v10, %v1825_v50 }
 0x2e5   :  { %v1682_v25 = vpop.xlane.xlu0 %1681 }
 0x2e6   :  { %v1708_v27 = vadd.f32 %v2888_v3, %v1682_v25 }
 0x2e8   :  { %v1833_v46 = vrot.slane %v1708_v27, %v1832_v52 }
 0x2f2   :  { %v1662_v26 = vpop.xlane.xlu1 %1661 }
 0x2f3   :  { %v1704_v23 = vadd.f32 %v2888_v3, %v1662_v26 }
 0x2f5   :  { %v1805_v44 = vrot.slane %v1704_v23, %v1804_v24 }
 0x2f7   :  { %v1807_v39 = vsel %vm1806_vm11, %v1805_v44, %v1800_v32 }
 0x2f8   :  { %v1814_v0 = vsel %vm1813_vm12, %v1812_v7, %v1807_v39 }
 0x2f9   :  { %v1821_v48 = vsel %vm1820_vm13, %v1819_v36, %v1814_v0 }
 0x2fa   :  { %v1828_v51 = vsel %vm1827_vm14, %v1826_v1, %v1821_v48 }
 0x2fb   :  { %v1835_v49 = vsel %vm1834_vm15, %v1833_v46, %v1828_v51 }
 0x2fc   :  { %1837 = vst [vmem:[%s2951_s7] sm:$0x1] %v1835_v49 }
 0x2fd   :  { %1842 = vsyncpa [#allocation4], 1 }

</bundles_post_ra>
